<compile_context>
chip_gen: v5e
topology: v5e:2x2
jax: 0.10.0
libtpu: 0.0.40
codegen_flags: <defaults>
</compile_context>

<pallas_src>
import jax
import jax.numpy as jnp
from jax import lax
from jax.experimental import pallas as pl
from jax.experimental.pallas import tpu as pltpu


# ----------------------------- Pallas kernel --------------------------------
def _conv_ln_kernel(a_ref, b_ref, w_ref, g_ref, beta_ref, o_ref):
    """Fused 3x3/stride-2 conv (9 accumulated tap matmuls) + LayerNorm.

    a_ref    : (th, 2, Wp2, 2C) bf16  x_pad rows 2h (parity 0) and 2h+1
                                      (parity 1); even/odd columns are folded
                                      side-by-side into the channel dim.
    b_ref    : (th, Wp2, 2C)    bf16  x_pad rows 2h+2 (column-parity folded).
    w_ref    : (9, C, 2C)       bf16  conv weight per (kh, kw) tap.
    g_ref    : (1, 2C)          f32   LayerNorm gamma.
    beta_ref : (1, 2C)          f32   LayerNorm beta.
    o_ref    : (th*W_out, 2C)         output rows for this block.
    """
    th, _, wp2, c2 = a_ref.shape
    c = c2 // 2
    w_out = wp2 - 1
    m = th * w_out

    # Row slabs for the three kernel rows kh = 0, 1, 2.
    slab0 = a_ref[:, 0, :, :]          # x_pad rows 2h
    slab1 = a_ref[:, 1, :, :]          # x_pad rows 2h+1
    slab2 = b_ref[...]                 # x_pad rows 2h+2

    acc = jnp.zeros((m, c2), dtype=jnp.float32)
    for kh, slab in enumerate((slab0, slab1, slab2)):
        # Column parity lives in the channel dim of the slab:
        #   [.., :c] -> input column 2w   (kw = 0)
        #   [.., c:] -> input column 2w+1 (kw = 1)
        #   shift by one folded column -> input column 2w+2 (kw = 2)
        taps = (slab[:, :w_out, :c],
                slab[:, :w_out, c:],
                slab[:, 1:, :c])
        for kw, tap in enumerate(taps):
            acc = acc + jnp.dot(tap.reshape(m, c), w_ref[3 * kh + kw],
                                preferred_element_type=jnp.float32)

    # LayerNorm(2C, eps=1e-6) in f32, single pass (sum and sum of squares).
    inv_c2 = 1.0 / c2
    mean = jnp.sum(acc, axis=-1, keepdims=True) * inv_c2
    ex2 = jnp.sum(acc * acc, axis=-1, keepdims=True) * inv_c2
    var = ex2 - mean * mean
    y = (acc - mean) * lax.rsqrt(var + 1e-6)
    o_ref[...] = (y * g_ref[...] + beta_ref[...]).astype(o_ref.dtype)


# ------------------------------ wrapper --------------------------------------
def downsample_layer(x, w_hwio, gamma, beta, *, rows_per_step=None,
                     out_dtype=None):
    """x: (N, H, W, C) channels_last.  w_hwio: (3, 3, C, 2C).  gamma/beta: (2C,).

    Returns (N, H_out, W_out, 2C).  Pass out_dtype=jnp.bfloat16 to halve the
    output writeback if the consumer accepts bf16.
    """
    N, H, W, C = x.shape
    C2 = 2 * C
    H_out = (H - 1) // 2 + 1
    W_out = (W - 1) // 2 + 1
    Hp2, Wp2 = H_out + 1, W_out + 1
    if out_dtype is None:
        out_dtype = x.dtype

    # ---- layout prep (cheap, XLA-fused; no (M, 9C) im2col tensor) -----------
    # bf16 conv operands: native MXU dtype and half the DMA bytes.
    x_pad = jnp.pad(
        x.astype(jnp.bfloat16),
        ((0, 0), (1, 2 * Hp2 - H - 1), (1, 2 * Wp2 - W - 1), (0, 0)))
    # Free row-major reshape: fold row parity and column parity; even/odd
    # columns end up adjacent in the channel dim.
    x_a = x_pad.reshape(N, Hp2, 2, Wp2, C2)
    # kh == 2 needs rows 2h+2, which are offset by one Hp2-row from the block
    # above; materialize just that (half-input-sized) stream so BlockSpec
    # indexing stays block-aligned.
    x_b = x_pad[:, 2:2 * H_out + 2:2, :, :].reshape(N, H_out, Wp2, C2)

    w9 = w_hwio.reshape(9, C, C2).astype(jnp.bfloat16)
    g2 = gamma.reshape(1, C2).astype(jnp.float32)
    b2 = beta.reshape(1, C2).astype(jnp.float32)

    # ---- tile selection: th output rows per grid step ------------------------
    if rows_per_step is None:
        cands = []
        for d in range(1, H_out + 1):
            if H_out % d != 0:
                continue
            m_rows = d * W_out
            if m_rows <= 2048 and (m_rows % 8 == 0 or d == H_out):
                cands.append(d)
        rows_per_step = max(cands) if cands else H_out
    th = rows_per_step
    assert H_out % th == 0, (H_out, th)
    m_step = th * W_out
    grid = (N, H_out // th)

    # ---- VMEM budget (double-buffered inputs/outputs + headroom) ------------
    itemsize_out = jnp.dtype(out_dtype).itemsize
    vmem_est = (2 * th * 2 * Wp2 * C2 * 2        # x_a blocks
                + 2 * th * Wp2 * C2 * 2          # x_b blocks
                + 2 * 9 * C * C2 * 2             # weights (grid-invariant)
                + 4 * C2 * 4                     # gamma / beta
                + 2 * m_step * C2 * itemsize_out)
    vmem_limit = int(min(64 * 1024 * 1024,        # fits v7x physical VMEM
                         max(32 * 1024 * 1024, 4 * vmem_est)))

    out = pl.pallas_call(
        _conv_ln_kernel,
        out_shape=jax.ShapeDtypeStruct((N, H_out * W_out, C2), out_dtype),
        grid_spec=pltpu.PrefetchScalarGridSpec(
            num_scalar_prefetch=0,
            grid=grid,
            in_specs=[
                pl.BlockSpec((None, th, 2, Wp2, C2),
                             lambda n, h: (n, h, 0, 0, 0)),
                pl.BlockSpec((None, th, Wp2, C2),
                             lambda n, h: (n, h, 0, 0)),
                pl.BlockSpec((9, C, C2), lambda n, h: (0, 0, 0)),
                pl.BlockSpec((1, C2), lambda n, h: (0, 0)),
                pl.BlockSpec((1, C2), lambda n, h: (0, 0)),
            ],
            out_specs=pl.BlockSpec((None, m_step, C2), lambda n, h: (n, h, 0)),
        ),
        compiler_params=pltpu.CompilerParams(
            dimension_semantics=("parallel", "parallel"),
            vmem_limit_bytes=vmem_limit,
        ),
    )(x_a, x_b, w9, g2, b2)

    return out.reshape(N, H_out, W_out, C2)


# ----------------------------- reference (plain JAX) -------------------------
def downsample_layer_ref(x, w_hwio, gamma, beta):
    y = lax.conv_general_dilated(
        x, w_hwio,
        window_strides=(2, 2),
        padding=((1, 1), (1, 1)),
        dimension_numbers=("NHWC", "HWIO", "NHWC"),
        precision=lax.Precision.HIGHEST,
    )
    mean = jnp.mean(y, axis=-1, keepdims=True)
    var = jnp.mean((y - mean) ** 2, axis=-1, keepdims=True)
    return (y - mean) / jnp.sqrt(var + 1e-6) * gamma + beta


# --------------------------------- main ---------------------------------------
if __name__ == "__main__":
    key = jax.random.PRNGKey(0)
    k_x, k_w, k_g, k_b = jax.random.split(key, 4)

    N, H, W, C = 2, 16, 16, 4
    C2 = 2 * C

    x = jax.random.normal(k_x, (N, H, W, C), dtype=jnp.float32)

    # Deterministic synthetic parameters (PyTorch conv weight is (2C, C, 3, 3);
    # build its HWIO equivalent).
    w_oihw = jax.random.normal(k_w, (C2, C, 3, 3), dtype=jnp.float32) * 0.1
    w_hwio = jnp.transpose(w_oihw, (2, 3, 1, 0))          # (3, 3, C, 2C)
    gamma = 1.0 + 0.1 * jax.random.normal(k_g, (C2,), dtype=jnp.float32)
    beta = 0.1 * jax.random.normal(k_b, (C2,), dtype=jnp.float32)

    fn = jax.jit(downsample_layer)
    out = jax.block_until_ready(fn(x, w_hwio, gamma, beta))
    assert out.shape == (N, (H - 1) // 2 + 1, (W - 1) // 2 + 1, C2), out.shape

    # Tight check: same bf16-rounded conv operands as the kernel (the MXU
    # matmul runs bf16 x bf16 with f32 accumulation), f32 everywhere else.
    x_q = x.astype(jnp.bfloat16).astype(jnp.float32)
    w_q = w_hwio.astype(jnp.bfloat16).astype(jnp.float32)
    ref_q = downsample_layer_ref(x_q, w_q, gamma, beta)
    err_q = float(jnp.max(jnp.abs(out.astype(jnp.float32) - ref_q)))
    assert err_q < 2e-3, err_q

    # Loose sanity check against the full-f32 reference (only difference is
    # bf16 rounding of the conv inputs/weights).
    ref_f = downsample_layer_ref(x, w_hwio, gamma, beta)
    err_f = float(jnp.max(jnp.abs(out.astype(jnp.float32) - ref_f)))
    assert err_f < 1e-1, err_f

    print("KERNEL_OK")
</pallas_src>

<mosaic_0001>
module attributes {stable_mosaic.version = 11 : i64} {
  func.func @_conv_ln_kernel(%arg0: i32, %arg1: i32, %arg2: memref<1x8x2x9x8xbf16, #tpu.memory_space<vmem>>, %arg3: memref<1x8x9x8xbf16, #tpu.memory_space<vmem>>, %arg4: memref<9x4x8xbf16, #tpu.memory_space<vmem>>, %arg5: memref<1x8xf32, #tpu.memory_space<vmem>>, %arg6: memref<1x8xf32, #tpu.memory_space<vmem>>, %arg7: memref<1x64x8xf32, #tpu.memory_space<vmem>>) attributes {dimension_semantics = [#tpu.dimension_semantics<parallel>, #tpu.dimension_semantics<parallel>], iteration_bounds = array<i64: 2, 1>, scalar_prefetch = 0 : i64, scratch_operands = 0 : i64, tpu.core_type = #tpu.core_type<tc>, window_params = [{transform_indices = @transform_0, window_bounds = array<i64: 1, 8, 2, 9, 8>}, {transform_indices = @transform_1, window_bounds = array<i64: 1, 8, 9, 8>}, {pipeline_mode = #tpu.pipeline_mode<synchronous>, transform_indices = @transform_2, window_bounds = array<i64: 9, 4, 8>}, {pipeline_mode = #tpu.pipeline_mode<synchronous>, transform_indices = @transform_3, window_bounds = array<i64: 1, 8>}, {pipeline_mode = #tpu.pipeline_mode<synchronous>, transform_indices = @transform_4, window_bounds = array<i64: 1, 8>}, {transform_indices = @transform_5, window_bounds = array<i64: 1, 64, 8>}]} {
    %c0 = arith.constant 0 : index
    %c0_0 = arith.constant 0 : index
    %c0_1 = arith.constant 0 : index
    %c0_2 = arith.constant 0 : index
    %c0_3 = arith.constant 0 : index
    %0 = vector.load %arg2[%c0, %c0_0, %c0_1, %c0_2, %c0_3] : memref<1x8x2x9x8xbf16, #tpu.memory_space<vmem>>, vector<1x8x1x9x8xbf16>
    %1 = vector.shape_cast %0 : vector<1x8x1x9x8xbf16> to vector<8x9x8xbf16>
    %c0_4 = arith.constant 0 : index
    %c0_5 = arith.constant 0 : index
    %c1 = arith.constant 1 : index
    %c0_6 = arith.constant 0 : index
    %c0_7 = arith.constant 0 : index
    %2 = vector.load %arg2[%c0_4, %c0_5, %c1, %c0_6, %c0_7] : memref<1x8x2x9x8xbf16, #tpu.memory_space<vmem>>, vector<1x8x1x9x8xbf16>
    %3 = vector.shape_cast %2 : vector<1x8x1x9x8xbf16> to vector<8x9x8xbf16>
    %c0_8 = arith.constant 0 : index
    %c0_9 = arith.constant 0 : index
    %c0_10 = arith.constant 0 : index
    %c0_11 = arith.constant 0 : index
    %4 = vector.load %arg3[%c0_8, %c0_9, %c0_10, %c0_11] : memref<1x8x9x8xbf16, #tpu.memory_space<vmem>>, vector<1x8x9x8xbf16>
    %5 = vector.shape_cast %4 : vector<1x8x9x8xbf16> to vector<8x9x8xbf16>
    %cst = arith.constant 0.000000e+00 : f32
    %6 = vector.broadcast %cst : f32 to vector<64x8xf32>
    %7 = vector.extract_strided_slice %1 {offsets = [0, 0, 0], sizes = [8, 8, 4], strides = [1, 1, 1]} : vector<8x9x8xbf16> to vector<8x8x4xbf16>
    %8 = vector.extract_strided_slice %1 {offsets = [0, 0, 4], sizes = [8, 8, 4], strides = [1, 1, 1]} : vector<8x9x8xbf16> to vector<8x8x4xbf16>
    %9 = vector.extract_strided_slice %1 {offsets = [0, 1, 0], sizes = [8, 8, 4], strides = [1, 1, 1]} : vector<8x9x8xbf16> to vector<8x8x4xbf16>
    %10 = vector.shape_cast %7 : vector<8x8x4xbf16> to vector<64x4xbf16>
    %c0_12 = arith.constant 0 : index
    %c0_13 = arith.constant 0 : index
    %c0_14 = arith.constant 0 : index
    %11 = vector.load %arg4[%c0_12, %c0_13, %c0_14] : memref<9x4x8xbf16, #tpu.memory_space<vmem>>, vector<1x4x8xbf16>
    %12 = vector.shape_cast %11 : vector<1x4x8xbf16> to vector<4x8xbf16>
    %cst_15 = arith.constant dense<0.000000e+00> : vector<64x8xf32>
    %13 = tpu.matmul %10, %12, %cst_15 {dimension_numbers = #tpu.dot_dimension_numbers<[1], [0], [0], [1], [0, 0, 1, 1], [], []>} : vector<64x4xbf16>, vector<4x8xbf16>, vector<64x8xf32> -> vector<64x8xf32>
    %14 = arith.addf %6, %13 : vector<64x8xf32>
    %15 = vector.shape_cast %8 : vector<8x8x4xbf16> to vector<64x4xbf16>
    %c1_16 = arith.constant 1 : index
    %c0_17 = arith.constant 0 : index
    %c0_18 = arith.constant 0 : index
    %16 = vector.load %arg4[%c1_16, %c0_17, %c0_18] : memref<9x4x8xbf16, #tpu.memory_space<vmem>>, vector<1x4x8xbf16>
    %17 = vector.shape_cast %16 : vector<1x4x8xbf16> to vector<4x8xbf16>
    %cst_19 = arith.constant dense<0.000000e+00> : vector<64x8xf32>
    %18 = tpu.matmul %15, %17, %cst_19 {dimension_numbers = #tpu.dot_dimension_numbers<[1], [0], [0], [1], [0, 0, 1, 1], [], []>} : vector<64x4xbf16>, vector<4x8xbf16>, vector<64x8xf32> -> vector<64x8xf32>
    %19 = arith.addf %14, %18 : vector<64x8xf32>
    %20 = vector.shape_cast %9 : vector<8x8x4xbf16> to vector<64x4xbf16>
    %c2 = arith.constant 2 : index
    %c0_20 = arith.constant 0 : index
    %c0_21 = arith.constant 0 : index
    %21 = vector.load %arg4[%c2, %c0_20, %c0_21] : memref<9x4x8xbf16, #tpu.memory_space<vmem>>, vector<1x4x8xbf16>
    %22 = vector.shape_cast %21 : vector<1x4x8xbf16> to vector<4x8xbf16>
    %cst_22 = arith.constant dense<0.000000e+00> : vector<64x8xf32>
    %23 = tpu.matmul %20, %22, %cst_22 {dimension_numbers = #tpu.dot_dimension_numbers<[1], [0], [0], [1], [0, 0, 1, 1], [], []>} : vector<64x4xbf16>, vector<4x8xbf16>, vector<64x8xf32> -> vector<64x8xf32>
    %24 = arith.addf %19, %23 : vector<64x8xf32>
    %25 = vector.extract_strided_slice %3 {offsets = [0, 0, 0], sizes = [8, 8, 4], strides = [1, 1, 1]} : vector<8x9x8xbf16> to vector<8x8x4xbf16>
    %26 = vector.extract_strided_slice %3 {offsets = [0, 0, 4], sizes = [8, 8, 4], strides = [1, 1, 1]} : vector<8x9x8xbf16> to vector<8x8x4xbf16>
    %27 = vector.extract_strided_slice %3 {offsets = [0, 1, 0], sizes = [8, 8, 4], strides = [1, 1, 1]} : vector<8x9x8xbf16> to vector<8x8x4xbf16>
    %28 = vector.shape_cast %25 : vector<8x8x4xbf16> to vector<64x4xbf16>
    %c3 = arith.constant 3 : index
    %c0_23 = arith.constant 0 : index
    %c0_24 = arith.constant 0 : index
    %29 = vector.load %arg4[%c3, %c0_23, %c0_24] : memref<9x4x8xbf16, #tpu.memory_space<vmem>>, vector<1x4x8xbf16>
    %30 = vector.shape_cast %29 : vector<1x4x8xbf16> to vector<4x8xbf16>
    %cst_25 = arith.constant dense<0.000000e+00> : vector<64x8xf32>
    %31 = tpu.matmul %28, %30, %cst_25 {dimension_numbers = #tpu.dot_dimension_numbers<[1], [0], [0], [1], [0, 0, 1, 1], [], []>} : vector<64x4xbf16>, vector<4x8xbf16>, vector<64x8xf32> -> vector<64x8xf32>
    %32 = arith.addf %24, %31 : vector<64x8xf32>
    %33 = vector.shape_cast %26 : vector<8x8x4xbf16> to vector<64x4xbf16>
    %c4 = arith.constant 4 : index
    %c0_26 = arith.constant 0 : index
    %c0_27 = arith.constant 0 : index
    %34 = vector.load %arg4[%c4, %c0_26, %c0_27] : memref<9x4x8xbf16, #tpu.memory_space<vmem>>, vector<1x4x8xbf16>
    %35 = vector.shape_cast %34 : vector<1x4x8xbf16> to vector<4x8xbf16>
    %cst_28 = arith.constant dense<0.000000e+00> : vector<64x8xf32>
    %36 = tpu.matmul %33, %35, %cst_28 {dimension_numbers = #tpu.dot_dimension_numbers<[1], [0], [0], [1], [0, 0, 1, 1], [], []>} : vector<64x4xbf16>, vector<4x8xbf16>, vector<64x8xf32> -> vector<64x8xf32>
    %37 = arith.addf %32, %36 : vector<64x8xf32>
    %38 = vector.shape_cast %27 : vector<8x8x4xbf16> to vector<64x4xbf16>
    %c5 = arith.constant 5 : index
    %c0_29 = arith.constant 0 : index
    %c0_30 = arith.constant 0 : index
    %39 = vector.load %arg4[%c5, %c0_29, %c0_30] : memref<9x4x8xbf16, #tpu.memory_space<vmem>>, vector<1x4x8xbf16>
    %40 = vector.shape_cast %39 : vector<1x4x8xbf16> to vector<4x8xbf16>
    %cst_31 = arith.constant dense<0.000000e+00> : vector<64x8xf32>
    %41 = tpu.matmul %38, %40, %cst_31 {dimension_numbers = #tpu.dot_dimension_numbers<[1], [0], [0], [1], [0, 0, 1, 1], [], []>} : vector<64x4xbf16>, vector<4x8xbf16>, vector<64x8xf32> -> vector<64x8xf32>
    %42 = arith.addf %37, %41 : vector<64x8xf32>
    %43 = vector.extract_strided_slice %5 {offsets = [0, 0, 0], sizes = [8, 8, 4], strides = [1, 1, 1]} : vector<8x9x8xbf16> to vector<8x8x4xbf16>
    %44 = vector.extract_strided_slice %5 {offsets = [0, 0, 4], sizes = [8, 8, 4], strides = [1, 1, 1]} : vector<8x9x8xbf16> to vector<8x8x4xbf16>
    %45 = vector.extract_strided_slice %5 {offsets = [0, 1, 0], sizes = [8, 8, 4], strides = [1, 1, 1]} : vector<8x9x8xbf16> to vector<8x8x4xbf16>
    %46 = vector.shape_cast %43 : vector<8x8x4xbf16> to vector<64x4xbf16>
    %c6 = arith.constant 6 : index
    %c0_32 = arith.constant 0 : index
    %c0_33 = arith.constant 0 : index
    %47 = vector.load %arg4[%c6, %c0_32, %c0_33] : memref<9x4x8xbf16, #tpu.memory_space<vmem>>, vector<1x4x8xbf16>
    %48 = vector.shape_cast %47 : vector<1x4x8xbf16> to vector<4x8xbf16>
    %cst_34 = arith.constant dense<0.000000e+00> : vector<64x8xf32>
    %49 = tpu.matmul %46, %48, %cst_34 {dimension_numbers = #tpu.dot_dimension_numbers<[1], [0], [0], [1], [0, 0, 1, 1], [], []>} : vector<64x4xbf16>, vector<4x8xbf16>, vector<64x8xf32> -> vector<64x8xf32>
    %50 = arith.addf %42, %49 : vector<64x8xf32>
    %51 = vector.shape_cast %44 : vector<8x8x4xbf16> to vector<64x4xbf16>
    %c7 = arith.constant 7 : index
    %c0_35 = arith.constant 0 : index
    %c0_36 = arith.constant 0 : index
    %52 = vector.load %arg4[%c7, %c0_35, %c0_36] : memref<9x4x8xbf16, #tpu.memory_space<vmem>>, vector<1x4x8xbf16>
    %53 = vector.shape_cast %52 : vector<1x4x8xbf16> to vector<4x8xbf16>
    %cst_37 = arith.constant dense<0.000000e+00> : vector<64x8xf32>
    %54 = tpu.matmul %51, %53, %cst_37 {dimension_numbers = #tpu.dot_dimension_numbers<[1], [0], [0], [1], [0, 0, 1, 1], [], []>} : vector<64x4xbf16>, vector<4x8xbf16>, vector<64x8xf32> -> vector<64x8xf32>
    %55 = arith.addf %50, %54 : vector<64x8xf32>
    %56 = vector.shape_cast %45 : vector<8x8x4xbf16> to vector<64x4xbf16>
    %c8 = arith.constant 8 : index
    %c0_38 = arith.constant 0 : index
    %c0_39 = arith.constant 0 : index
    %57 = vector.load %arg4[%c8, %c0_38, %c0_39] : memref<9x4x8xbf16, #tpu.memory_space<vmem>>, vector<1x4x8xbf16>
    %58 = vector.shape_cast %57 : vector<1x4x8xbf16> to vector<4x8xbf16>
    %cst_40 = arith.constant dense<0.000000e+00> : vector<64x8xf32>
    %59 = tpu.matmul %56, %58, %cst_40 {dimension_numbers = #tpu.dot_dimension_numbers<[1], [0], [0], [1], [0, 0, 1, 1], [], []>} : vector<64x4xbf16>, vector<4x8xbf16>, vector<64x8xf32> -> vector<64x8xf32>
    %60 = arith.addf %55, %59 : vector<64x8xf32>
    %cst_41 = arith.constant dense<0.000000e+00> : vector<64xf32>
    %61 = vector.multi_reduction <add>, %60, %cst_41 [1] : vector<64x8xf32> to vector<64xf32>
    %62 = vector.shape_cast %61 : vector<64xf32> to vector<64x1xf32>
    %cst_42 = arith.constant 1.250000e-01 : f32
    %63 = vector.broadcast %cst_42 : f32 to vector<64x1xf32>
    %64 = arith.mulf %62, %63 : vector<64x1xf32>
    %65 = arith.mulf %60, %60 : vector<64x8xf32>
    %cst_43 = arith.constant dense<0.000000e+00> : vector<64xf32>
    %66 = vector.multi_reduction <add>, %65, %cst_43 [1] : vector<64x8xf32> to vector<64xf32>
    %67 = vector.shape_cast %66 : vector<64xf32> to vector<64x1xf32>
    %cst_44 = arith.constant 1.250000e-01 : f32
    %68 = vector.broadcast %cst_44 : f32 to vector<64x1xf32>
    %69 = arith.mulf %67, %68 : vector<64x1xf32>
    %70 = arith.mulf %64, %64 : vector<64x1xf32>
    %71 = arith.subf %69, %70 : vector<64x1xf32>
    %72 = vector.broadcast %64 : vector<64x1xf32> to vector<64x8xf32>
    %73 = arith.subf %60, %72 : vector<64x8xf32>
    %cst_45 = arith.constant 9.99999997E-7 : f32
    %74 = vector.broadcast %cst_45 : f32 to vector<64x1xf32>
    %75 = arith.addf %71, %74 : vector<64x1xf32>
    %76 = math.rsqrt %75 : vector<64x1xf32>
    %77 = vector.broadcast %76 : vector<64x1xf32> to vector<64x8xf32>
    %78 = arith.mulf %73, %77 : vector<64x8xf32>
    %c0_46 = arith.constant 0 : index
    %c0_47 = arith.constant 0 : index
    %79 = vector.load %arg5[%c0_46, %c0_47] : memref<1x8xf32, #tpu.memory_space<vmem>>, vector<1x8xf32>
    %80 = vector.broadcast %79 : vector<1x8xf32> to vector<64x8xf32>
    %81 = arith.mulf %78, %80 : vector<64x8xf32>
    %c0_48 = arith.constant 0 : index
    %c0_49 = arith.constant 0 : index
    %82 = vector.load %arg6[%c0_48, %c0_49] : memref<1x8xf32, #tpu.memory_space<vmem>>, vector<1x8xf32>
    %83 = vector.broadcast %82 : vector<1x8xf32> to vector<64x8xf32>
    %84 = arith.addf %81, %83 : vector<64x8xf32>
    %c0_50 = arith.constant 0 : index
    %c0_51 = arith.constant 0 : index
    %c0_52 = arith.constant 0 : index
    %85 = vector.load %arg7[%c0_50, %c0_51, %c0_52] : memref<1x64x8xf32, #tpu.memory_space<vmem>>, vector<1x64x8xf32>
    %86 = vector.shape_cast %85 : vector<1x64x8xf32> to vector<64x8xf32>
    %87 = vector.shape_cast %84 : vector<64x8xf32> to vector<1x64x8xf32>
    tpu.vector_store %arg7[%c0_50, %c0_51, %c0_52], %87 {strides = array<i32>} : memref<1x64x8xf32, #tpu.memory_space<vmem>>, vector<1x64x8xf32>,
    return
  }
  func.func @transform_0(%arg0: i32, %arg1: i32) -> (i32, i32, i32, i32, i32) {
    %c0_i32 = arith.constant 0 : i32
    %c0_i32_0 = arith.constant 0 : i32
    %c0_i32_1 = arith.constant 0 : i32
    %c0_i32_2 = arith.constant 0 : i32
    return %arg0, %arg1, %c0_i32, %c0_i32_0, %c0_i32_1 : i32, i32, i32, i32, i32
  }
  func.func @transform_1(%arg0: i32, %arg1: i32) -> (i32, i32, i32, i32) {
    %c0_i32 = arith.constant 0 : i32
    %c0_i32_0 = arith.constant 0 : i32
    %c0_i32_1 = arith.constant 0 : i32
    return %arg0, %arg1, %c0_i32, %c0_i32_0 : i32, i32, i32, i32
  }
  func.func @transform_2(%arg0: i32, %arg1: i32) -> (i32, i32, i32) {
    %c0_i32 = arith.constant 0 : i32
    %c0_i32_0 = arith.constant 0 : i32
    %c0_i32_1 = arith.constant 0 : i32
    %c0_i32_2 = arith.constant 0 : i32
    return %c0_i32, %c0_i32_0, %c0_i32_1 : i32, i32, i32
  }
  func.func @transform_3(%arg0: i32, %arg1: i32) -> (i32, i32) {
    %c0_i32 = arith.constant 0 : i32
    %c0_i32_0 = arith.constant 0 : i32
    %c0_i32_1 = arith.constant 0 : i32
    return %c0_i32, %c0_i32_0 : i32, i32
  }
  func.func @transform_4(%arg0: i32, %arg1: i32) -> (i32, i32) {
    %c0_i32 = arith.constant 0 : i32
    %c0_i32_0 = arith.constant 0 : i32
    %c0_i32_1 = arith.constant 0 : i32
    return %c0_i32, %c0_i32_0 : i32, i32
  }
  func.func @transform_5(%arg0: i32, %arg1: i32) -> (i32, i32, i32) {
    %c0_i32 = arith.constant 0 : i32
    %c0_i32_0 = arith.constant 0 : i32
    return %arg0, %arg1, %c0_i32 : i32, i32, i32
  }
}

</mosaic_0001>

<bundles_post_ra>
// kernel: downsample_layer.1
= control target key start
LH: loop header
LB: loop body
LE: loop exit
PB: predicated region body
PF: predicated region fallthrough
CT: control target
= control target key end

     0   :  { %10 = vsyncpa [#allocation3], 0  ;;  %s2542_s0 = inlined_call_operand.vmem [shape: bf16[2,9,2,9,8], index: 0, kind: input, shape index: {}]   ;;  %s2543_s1 = inlined_call_operand.vmem [shape: bf16[2,8,9,8], index: 1, kind: input, shape index: {}]   ;;  %s2544_s2 = inlined_call_operand.vmem [shape: bf16[9,4,8], index: 2, kind: input, shape index: {}]   ;;  %s2545_s3 = inlined_call_operand.vmem [shape: f32[1,8], index: 3, kind: input, shape index: {}]   ;;  %s2546_s4 = inlined_call_operand.vmem [shape: f32[1,8], index: 4, kind: input, shape index: {}]   ;;  %s2547_s5 = inlined_call_operand.hbm [shape: f32[2,64,8], index: 5, kind: output, shape index: {}]  }
   0x1   :  { %12 = vsyncpa [#allocation3 + $0x1], 0  ;;  %s1981_s18 = smov 0   ;;  %s1983_s19 = smov 0  }
   0x2   :  { %s1985_s20 = smov 0   ;;  %s1987_s21 = smov 0  }
   0x3   :  { %s1989_s22 = smov 0   ;;  %s1991_s23 = smov 0  }
   0x4 LB: > { %s1652_s24 = sadd.s32 4294967295, %s1946_s23   ;;  %s1653_s25 = sadd.s32 4294967294, %s1946_s23   ;;  %s1946_s23 = sphi %s1991_s23, %s18_s23   ;;  %s1942_s22 = sphi %s1989_s22, %s2556_s22   ;;  %s1938_s21 = sphi %s1987_s21, %s2555_s21   ;;  %s1934_s20 = sphi %s1985_s20, %s2554_s20   ;;  %s1930_s19 = sphi %s1983_s19, %s2553_s19   ;;  %s1926_s18 = sphi %s1981_s18, %s2552_s18  }
   0x5   : > { %s30_s26 = sadd.s32 1, %s1942_s22  ;;  %s158_s27 = sadd.s32 1, %s1934_s20 }
   0x6   : > { %p32_p0 = scmp.ge.s32.totalorder %s30_s26, 2  ;;  %p168_p1 = scmp.ne.s32.totalorder %s1934_s20, %s1930_s19 }
   0x7   : > { %p169_p2 = scmp.eq.s32.totalorder %s1652_s24, 1  ;;  %p174_p3 = scmp.ne.s32.totalorder %s1930_s19, %s1926_s18 }
   0x8   : > { %s2558_s26 = smov (%p32_p0, %s30_s26), 0  ;;  %p175_p5 = scmp.eq.s32.totalorder %s1653_s25, 1 }
   0x9   : > { %p2021_p4 = por %p169_p2, %p168_p1  ;;  %s153_s29 = ssub.s32 %s1942_s22, %s2558_s26 }
   0xa   : > { %p1656_p6 = scmp.ge.s32.totalorder %s1946_s23, 1  ;;  %p156_p7 = scmp.eq.s32.totalorder %s153_s29, 0 }
   0xb   : > { %p2028_p8 = por %p175_p5, %p174_p3  ;;  %p242_p9 = scmp.lt.s32.totalorder %s1946_s23, 3 }
   0xc   : > { %s2034_s6 = scalar_select %p156_p7, %s1934_s20, %s158_s27  }
   0xd   : > { %p243_p10 = pnand %p1656_p6, %p242_p9 }
   0xe   : > { %p298_p11 = scmp.lt.s32.totalorder (!%p243_p10), %s1938_s21, 1  ;;  %s1948_s14 = smov (!%p243_p10), 124  }
   0xf   : > { %246 = sbr.rel (%p243_p10) target bundleno = 582 (0x246), region = 40  ;;  %s1787_s12 = sshll.u32 (!%p243_p10), %s1938_s21, 6 }
  0x10   : > { %s1545_s17 = scalar_lea.hbm (!%p243_p10), %s2547_s5, %s1787_s12  ;;  %s1888_s8 = scalar_lea.hbm (!%p243_p10), %s2547_s5, 128 }
  0x11   : > { %s1548_s25 = sshll.u32 (!%p243_p10), %s1545_s17, 4  ;;  %s1549_s25 = int_to_ptr.hbm [resolvable:$true] %s1548_s25 }
  0x12   : > { %s1882_s29 = sshra.s32 (!%p243_p10), %s1549_s25, 4  ;;  %s1883_s29 = int_to_ptr.hbm [resolvable:$true] %s1882_s29 }
  0x13   : > { %p1889_p1 = scmp.lt.s32.totalorder (!%p243_p10), %s1883_s29, %s2547_s5 }
  0x14   : > { %s2038_s7 = scalar_select %p298_p11, %s1938_s21, 1  ;;  %v1677_v0 = vld [vmem:[%s2544_s2 + $0x2] sm:$0x3]  ;;  %vm420_vm0 = vcmask 1041408   ;;  %v1702_v34 = vld [vmem:[%s2544_s2 + $0x4] sm:$0x3] }
  0x15   : > { %v422_v1 = vsel %vm420_vm0, %v1677_v0, 0  ;;  %v639_v36 = vsel %vm420_vm0, %v1702_v34, 0  ;;  %v1707_v37 = vld [vmem:[%s2544_s2 + $0x6] sm:$0x3]  ;;  %v376_v38 = vld [vmem:[%s2544_s2] sm:$0x3] }
  0x16   : > { %s1791_s10 = smul.u32 144, %s2038_s7  ;;  %1788 = vmatpush.bf16.msra.mxu1 %v422_v1  ;;  %1789 = vmatpush.bf16.msra.mxu2 %v422_v1  ;;  %s1774_s15 = sshll.u32 %s2038_s7, 6  ;;  %v713_v39 = vsel %vm420_vm0, %v1707_v37, 0  ;;  %v466_v40 = vsel %vm420_vm0, %v376_v38, 0  ;;  %v1728_v43 = vld [vmem:[%s2544_s2 + $0x8] sm:$0x3] }
  0x17   : > { %431 = vmatpush.bf16.msra.mxu0 %v422_v1  ;;  %1790 = vmatpush.bf16.msra.mxu3 %v422_v1  ;;  %s2094_s24 = scalar_lea.vmem %s2543_s1, %s1774_s15  ;;  %v775_v46 = vsel %vm420_vm0, %v1728_v43, 0  ;;  %v1738_v59 = vld [vmem:[%s2544_s2 + $0xc] sm:$0x3]  ;;  %v1733_v60 = vld [vmem:[%s2544_s2 + $0xa] sm:$0x3]  ;;  %vm407_vm1 = vcmask 31744  }
  0x18   : > { %s2048_s13 = scalar_lea.vmem %s2542_s0, %s1791_s10  ;;  %v1741_v25 = vld [vmem:[%s2094_s24] sm:$0xf]  ;;  %v1783_v26 = vld [vmem:[%s2094_s24 + $0x4] sm:$0xf0]  ;;  %v1745_v29 = vld [vmem:[%s2094_s24 + $0x10] sm:$0xf] }
  0x19   : > { %v1688_v2 = vld [vmem:[%s2048_s13 + $0x40] sm:$0xf]  ;;  %v1777_v3 = vld [vmem:[%s2048_s13 + $0x4c] sm:$0xf0]  ;;  %v1710_v8 = vld [vmem:[%s2048_s13 + $0x8] sm:$0xf]  ;;  %v2102_v28 = vor.u32 %v1783_v26, %v1741_v25 }
  0x1a   : > { %v1684_v4 = vld [vmem:[%s2048_s13 + $0x20] sm:$0xf]  ;;  %v2053_v5 = vor.u32 %v1777_v3, %v1688_v2  ;;  %v1776_v6 = vld [vmem:[%s2048_s13 + $0x2c] sm:$0xf0]  ;;  %v1779_v9 = vld [vmem:[%s2048_s13 + $0x14] sm:$0xf0]  ;;  %648 = vmatpush.bf16.msrb.mxu2 %v639_v36  ;;  %475 = vmatpush.bf16.msrb.mxu1 %v466_v40 }
  0x1b   : > { %v2056_v7 = vor.u32 %v1776_v6, %v1684_v4  ;;  %v1692_v10 = vld [vmem:[%s2048_s13 + $0x60] sm:$0xf]  ;;  %v1778_v11 = vld [vmem:[%s2048_s13 + $0x6c] sm:$0xf0]  ;;  %v2066_v12 = vor.u32 %v1779_v9, %v1710_v8  ;;  %v1714_v16 = vld [vmem:[%s2048_s13 + $0x28] sm:$0xf]  ;;  %722 = vmatpush.bf16.msrb.mxu3 %v713_v39  ;;  %784 = vmatpush.bf16.msrb.mxu0 %v775_v46 }
  0x1c   : > { %403 = vrot.lane.b32.xlu0 %v2053_v5, %s1948_s14  ;;  %v1680_v13 = vld [vmem:[%s2048_s13] sm:$0xf]  ;;  %v1775_v14 = vld [vmem:[%s2048_s13 + $0xc] sm:$0xf0]  ;;  %v2072_v15 = vor.u32 %v1778_v11, %v1692_v10  ;;  %v1780_v17 = vld [vmem:[%s2048_s13 + $0x34] sm:$0xf0] }
  0x1d   : > { %401 = vrot.lane.b32.xlu1 %v2056_v7, %s1948_s14  ;;  %754 = vrot.lane.b32.xlu2 %v2066_v12, %s1948_s14  ;;  %v2076_v18 = vor.u32 %v1775_v14, %v1680_v13  ;;  %v2078_v19 = vor.u32 %v1780_v17, %v1714_v16  ;;  %v1718_v20 = vld [vmem:[%s2048_s13 + $0x48] sm:$0xf]  ;;  %v1781_v21 = vld [vmem:[%s2048_s13 + $0x54] sm:$0xf0]  ;;  %vm497_vm2 = vsmask.f32 3328 }
  0x1e   : > { %v1722_v22 = vld [vmem:[%s2048_s13 + $0x68] sm:$0xf]  ;;  %v1782_v23 = vld [vmem:[%s2048_s13 + $0x74] sm:$0xf0]  ;;  %v2096_v24 = vor.u32 %v1781_v21, %v1718_v20  ;;  %v1749_v32 = vld [vmem:[%s2094_s24 + $0x20] sm:$0xf] }
  0x1f   : > { %v2100_v27 = vor.u32 %v1782_v23, %v1722_v22  ;;  %v1784_v30 = vld [vmem:[%s2094_s24 + $0x14] sm:$0xf0]  ;;  %v1785_v33 = vld [vmem:[%s2094_s24 + $0x24] sm:$0xf0]  ;;  %v327_v41 = vld [vmem:[%s2048_s13] sm:$0xf] }
  0x20   : > { %v2112_v31 = vor.u32 %v1784_v30, %v1745_v29  ;;  %v2121_v35 = vor.u32 %v1785_v33, %v1749_v32  ;;  %v329_v42 = vld [vmem:[%s2048_s13 + $0x10] sm:$0xf]  ;;  %v501_v44 = vshrl.u32 %v327_v41, 16  ;;  %v504_v45 = vshll.u32 %v327_v41, 16  ;;  %v328_v53 = vld [vmem:[%s2048_s13 + $0x4] sm:$0x1] }
  0x21   : > { %v515_v47 = vshrl.u32 %v329_v42, 16  ;;  %v518_v48 = vshll.u32 %v329_v42, 16  ;;  %v330_v54 = vld [vmem:[%s2048_s13 + $0x14] sm:$0x1]  ;;  %v510_v56 = vshll.u32 %v328_v53, 16  ;;  %v1027_v62 = vsel %vm420_vm0, %v1738_v59, 0 }
  0x22   : > { %v503_v49 = vrot.slane %v501_v44, 4  ;;  %v506_v50 = vrot.slane %v504_v45, 5  ;;  %v524_v58 = vshll.u32 %v330_v54, 16  ;;  %vm498_vm3 = vsmask.f32 7440  ;;  %s1884_s7 = scalar_lea.hbm %s1883_s29, 64 }
  0x23   : > { %v517_v51 = vrot.slane %v515_v47, 4  ;;  %v520_v52 = vrot.slane %v518_v48, 5  ;;  %v512_v0 = vrot.slane %v510_v56, 5  ;;  %v953_v3 = vsel %vm420_vm0, %v1733_v60, 0  ;;  %vm2151_vm4 = vmor %vm497_vm2, %vm498_vm3  ;;  %v331_v8 = vld [vmem:[%s2048_s13 + $0x20] sm:$0xf]  ;;  %p1885_p12 = scmp.ne.s32.totalorder %s1883_s29, %s1884_s7  ;;  %p1890_p2 = scmp.lt.s32.totalorder %s1888_s8, %s1884_s7 }
  0x24   : > { %405 = vrot.lane.b32.xlu0 %v2072_v15, %s1948_s14  ;;  %v507_v55 = vor.u32 %v506_v50, %v503_v49  ;;  %v526_v2 = vrot.slane %v524_v58, 5  ;;  %v333_v9 = vld [vmem:[%s2048_s13 + $0x30] sm:$0xf]  ;;  %v1759_v13 = vld [vmem:[%s2544_s2 + $0xe] sm:$0x3]  ;;  %v529_v14 = vshrl.u32 %v331_v8, 16 }
  0x25   : > { %399 = vrot.lane.b32.xlu1 %v2076_v18, %s1948_s14  ;;  %756 = vrot.lane.b32.xlu2 %v2078_v19, %s1948_s14  ;;  %v521_v57 = vor.u32 %v520_v52, %v517_v51  ;;  %v532_v16 = vshll.u32 %v331_v8, 16  ;;  %v543_v17 = vshrl.u32 %v333_v9, 16  ;;  %v546_v20 = vshll.u32 %v333_v9, 16  ;;  %v1764_v21 = vld [vmem:[%s2544_s2 + $0x10] sm:$0x3]  ;;  %p1886_p13 = pnand %p1885_p12, %p2021_p4  ;;  %p1891_p3 = por %p1890_p2, %p1889_p1 }
  0x26   : > { %v508_v61 = vrot.slane %v507_v55, 4  ;;  %v1089_v22 = vsel %vm420_vm0, %v1759_v13, 0  ;;  %v1267_v29 = vsel %vm420_vm0, %v1764_v21, 0  ;;  %v332_v32 = vld [vmem:[%s2048_s13 + $0x24] sm:$0x1]  ;;  %v531_v33 = vrot.slane %v529_v14, 4 }
  0x27   : > { %v522_v1 = vrot.slane %v521_v57, 4  ;;  %v534_v34 = vrot.slane %v532_v16, 5  ;;  %v545_v36 = vrot.slane %v543_v17, 4  ;;  %v548_v37 = vrot.slane %v546_v20, 5  ;;  %v334_v38 = vld [vmem:[%s2048_s13 + $0x34] sm:$0x1]  ;;  %p1887_p0 = pneg %p1886_p13 }
  0x28   : > { %v513_v10 = vsel %vm2151_vm4, %v508_v61, %v512_v0  ;;  %v1753_v39 = vld [vmem:[%s2094_s24 + $0x30] sm:$0xf]  ;;  %v1786_v40 = vld [vmem:[%s2094_s24 + $0x34] sm:$0xf0]  ;;  %v538_v44 = vshll.u32 %v332_v32, 16  ;;  %v552_v46 = vshll.u32 %v334_v38, 16 }
  0x29   : > { %v527_v11 = vsel %vm2151_vm4, %v522_v1, %v526_v2  ;;  %v614_v25 = vunpack.c.l.b16 %v513_v10  ;;  %v2176_v41 = vor.u32 %v1786_v40, %v1753_v39  ;;  %v535_v43 = vor.u32 %v534_v34, %v531_v33  ;;  %v335_v51 = vld [vmem:[%s2048_s13 + $0x40] sm:$0xf]  ;;  %v337_v52 = vld [vmem:[%s2048_s13 + $0x50] sm:$0xf]  ;;  %v336_v1 = vld [vmem:[%s2048_s13 + $0x44] sm:$0x1]  ;;  %p1892_p5 = pnand %p1891_p3, %p1887_p0 }
  0x2a   : > { %v615_v26 = vunpack.c.l.b16 %v527_v11  ;;  %v549_v45 = vor.u32 %v548_v37, %v545_v36  ;;  %v540_v48 = vrot.slane %v538_v44, 5  ;;  %v554_v50 = vrot.slane %v552_v46, 5  ;;  %v338_v2 = vld [vmem:[%s2048_s13 + $0x54] sm:$0x1]  ;;  %v339_v11 = vld [vmem:[%s2048_s13 + $0x60] sm:$0xf] }
  0x2b   : > { %v536_v47 = vrot.slane %v535_v43, 4  ;;  %v557_v55 = vshrl.u32 %v335_v51, 16  ;;  %v560_v56 = vshll.u32 %v335_v51, 16  ;;  %v571_v57 = vshrl.u32 %v337_v52, 16  ;;  %v341_v13 = vld [vmem:[%s2048_s13 + $0x70] sm:$0xf] }
  0x2c   : > { %758 = vrot.lane.b32.xlu0 %v2096_v24, %s1948_s14  ;;  %v622_v42 = vpack.c.b16 %v615_v26, %v614_v25  ;;  %v550_v49 = vrot.slane %v549_v45, 4  ;;  %v574_v58 = vshll.u32 %v337_v52, 16  ;;  %v566_v8 = vshll.u32 %v336_v1, 16  ;;  %v340_v34 = vld [vmem:[%s2048_s13 + $0x64] sm:$0x1] }
  0x2d   : > { %760 = vrot.lane.b32.xlu1 %v2100_v27, %s1948_s14  ;;  %1068 = vrot.lane.b32.xlu2 %v2102_v28, %s1948_s14  ;;  %v541_v53 = vsel %vm2151_vm4, %v536_v47, %v540_v48  ;;  %v559_v61 = vrot.slane %v557_v55, 4  ;;  %v580_v10 = vshll.u32 %v338_v2, 16  ;;  %v585_v20 = vshrl.u32 %v339_v11, 16  ;;  %v342_v36 = vld [vmem:[%s2048_s13 + $0x74] sm:$0x1] }
  0x2e   : > { %v555_v54 = vsel %vm2151_vm4, %v550_v49, %v554_v50  ;;  %v576_v0 = vrot.slane %v574_v58, 5  ;;  %v568_v14 = vrot.slane %v566_v8, 5  ;;  %v588_v21 = vshll.u32 %v339_v11, 16  ;;  %v1661_v49 = vld [vmem:[%s2048_s13 + $0x8] sm:$0xf] }
  0x2f   : > { %v617_v60 = vunpack.c.l.b16 %v555_v54  ;;  %v582_v17 = vrot.slane %v580_v10, 5  ;;  %v594_v40 = vshll.u32 %v340_v34, 16  ;;  %v608_v43 = vshll.u32 %v342_v36, 16  ;;  %v1663_v50 = vld [vmem:[%s2048_s13 + $0x18] sm:$0xf] }
  0x30   : > { %v590_v32 = vrot.slane %v588_v21, 5  ;;  %v815_v52 = vshrl.u32 %v1661_v49, 16  ;;  %v829_v54 = vshrl.u32 %v1663_v50, 16  ;;  %v832_v55 = vshll.u32 %v1663_v50, 16  ;;  %v1666_v50 = vld [vmem:[%s2048_s13 + $0x2c] sm:$0x1] }
  0x31   : > { %v596_v46 = vrot.slane %v594_v40, 5  ;;  %v610_v48 = vrot.slane %v608_v43, 5  ;;  %vm1306_vm5 = vcmask 64512  }
  0x34   : > { %1070 = vrot.lane.b32.xlu0 %v2112_v31, %s1948_s14 }
  0x35   : > { %1072 = vrot.lane.b32.xlu1 %v2121_v35, %s1948_s14  ;;  %1074 = vrot.lane.b32.xlu2 %v2176_v41, %s1948_s14 }
  0x77   : > { %v755_v59 = vpop.permute.xlu2 %754 }
  0x8e   : > { %v404_v63 = vpop.permute.xlu0 %403 }
  0x8f   : > { %v402_v4 = vpop.permute.xlu1 %401  ;;  %1696 = vmatmul.msk.bf16.vlgmr.msra.gmra.mxu2 %vm407_vm1, %v404_v63  ;;  %v573_v63 = vrot.slane %v571_v57, 4 }
  0x90   : > { %1695 = vmatmul.msk.bf16.vlgmr.msra.gmra.mxu1 %vm407_vm1, %v402_v4  ;;  %1036 = vmatpush.bf16.msra.mxu2 %v1027_v62  ;;  %v562_v62 = vrot.slane %v560_v56, 5 }
  0x91   : > { %962 = vmatpush.bf16.msra.mxu1 %v953_v3  ;;  %v577_v9 = vor.u32 %v576_v0, %v573_v63  ;;  %v360_v63 = vld [vmem:[%s2094_s24] sm:$0xf]  ;;  %v362_v0 = vld [vmem:[%s2094_s24 + $0x8] sm:$0xf] }
  0x92   : > { %v563_v4 = vor.u32 %v562_v62, %v559_v61  ;;  %v1662_v61 = vld [vmem:[%s2048_s13 + $0xc] sm:$0x1]  ;;  %v1664_v62 = vld [vmem:[%s2048_s13 + $0x1c] sm:$0x1]  ;;  %v1132_v10 = vshll.u32 %v360_v63, 16  ;;  %v1143_v11 = vshrl.u32 %v362_v0, 16 }
  0x93   : > { %v578_v16 = vrot.slane %v577_v9, 4  ;;  %v838_v8 = vshll.u32 %v1664_v62, 16  ;;  %v1129_v9 = vshrl.u32 %v360_v63, 16 }
  0x94   : > { %v1145_v21 = vrot.slane %v1143_v11, 4  ;;  %v1671_v11 = vld [vmem:[%s2048_s13 + $0x58] sm:$0xf] }
  0x95   : > { %v583_v26 = vsel %vm2151_vm4, %v578_v16, %v582_v17  ;;  %v840_v16 = vrot.slane %v838_v8, 5  ;;  %v1131_v17 = vrot.slane %v1129_v9, 4 }
  0x96   : > { %v406_v23 = vpop.permute.xlu0 %405  ;;  %v619_v38 = vunpack.c.l.b16 %v583_v26  ;;  %v1665_v26 = vld [vmem:[%s2048_s13 + $0x28] sm:$0xf] }
  0x97   : > { %v400_v30 = vpop.permute.xlu1 %399  ;;  %1697 = vmatmul.msk.bf16.vlgmr.msra.gmra.mxu3 %vm407_vm1, %v406_v23  ;;  %v602_v23 = vshll.u32 %v341_v13, 16 }
  0x98   : > { %1694 = vmatmul.msk.bf16.vlgmr.msra.gmra.mxu0 %vm407_vm1, %v400_v30  ;;  %1098 = vmatpush.bf16.msra.mxu3 %v1089_v22  ;;  %v599_v22 = vshrl.u32 %v341_v13, 16  ;;  %v587_v30 = vrot.slane %v585_v20, 4  ;;  %v1146_v13 = vshll.u32 %v362_v0, 16  ;;  %v1134_v20 = vrot.slane %v1132_v10, 5  ;;  %v1669_v10 = vld [vmem:[%s2048_s13 + $0x48] sm:$0xf] }
  0x99   : > { %1276 = vmatpush.bf16.msra.mxu0 %v1267_v29  ;;  %v757_v29 = vpop.permute.xlu2 %756  ;;  %v604_v33 = vrot.slane %v602_v23, 5  ;;  %v361_v23 = vld [vmem:[%s2094_s24 + $0x4] sm:$0x1] }
  0x9a   : > { %v591_v39 = vor.u32 %v590_v32, %v587_v30 }
  0x9c   : > { %v592_v45 = vrot.slane %v591_v39, 4 }
  0x9e   : > { %v759_v56 = vpop.permute.xlu0 %758 }
  0x9f   : > { %1703 = vmatmul.msk.bf16.vlgmr.msrb.gmra.mxu2 %vm407_vm1, %v622_v42  ;;  %v761_v40 = vpop.permute.xlu1 %760 }
  0xa0   : > { %1698 = vmatmul.msk.bf16.vlgmr.msrb.gmra.mxu1 %vm407_vm1, %v2076_v18  ;;  %v616_v18 = vunpack.c.l.b16 %v541_v53  ;;  %v818_v53 = vshll.u32 %v1661_v49, 16 }
  0xa2   : > { %v623_v3 = vpack.c.b16 %v617_v60, %v616_v18  ;;  %v820_v18 = vrot.slane %v818_v53, 5  ;;  %v831_v60 = vrot.slane %v829_v54, 4  ;;  %v1668_v54 = vld [vmem:[%s2048_s13 + $0x3c] sm:$0x1] }
  0xa3   : > { %v866_v62 = vshll.u32 %v1668_v54, 16 }
  0xa7   : > { %1724 = vmatmul.msk.bf16.vlgmr.msrb.gmra.mxu3 %vm407_vm1, %v2066_v12  ;;  %v564_v12 = vrot.slane %v563_v4, 4 }
  0xa8   : > { %1729 = vmatmul.msk.bf16.vlgmr.msrb.gmra.mxu0 %vm407_vm1, %v755_v59  ;;  %v817_v59 = vrot.slane %v815_v52, 4 }
  0xa9   : > { %v569_v25 = vsel %vm2151_vm4, %v564_v12, %v568_v14 }
  0xaa   : > { %v618_v37 = vunpack.c.l.b16 %v569_v25  ;;  %v821_v2 = vor.u32 %v820_v18, %v817_v59  ;;  %v363_v25 = vld [vmem:[%s2094_s24 + $0xc] sm:$0x1] }
  0xab   : > { %v1152_v36 = vshll.u32 %v363_v25, 16  ;;  %v885_v25 = vshrl.u32 %v1671_v11, 16 }
  0xac   : > { %v624_v44 = vpack.c.b16 %v619_v38, %v618_v37  ;;  %v843_v37 = vshrl.u32 %v1665_v26, 16  ;;  %v846_v38 = vshll.u32 %v1665_v26, 16  ;;  %v1069_v26 = vpop.permute.xlu2 %1068 }
  0xad   : > { %v1154_v49 = vrot.slane %v1152_v36, 5 }
  0xaf   : > { %1704 = vmatmul.msk.bf16.gmra.mxu2 %vm407_vm1, %v623_v3  ;;  %v824_v3 = vshll.u32 %v1662_v61, 16 }
  0xb0   : > { %1699 = vmatmul.msk.bf16.gmra.mxu1 %vm407_vm1, %v2056_v7  ;;  %v601_v7 = vrot.slane %v599_v22, 4  ;;  %v1148_v22 = vrot.slane %v1146_v13, 5 }
  0xb1   : > { %v826_v12 = vrot.slane %v824_v3, 5  ;;  %v365_v3 = vld [vmem:[%s2094_s24 + $0x14] sm:$0x1] }
  0xb2   : > { %v605_v42 = vor.u32 %v604_v33, %v601_v7  ;;  %v1135_v7 = vor.u32 %v1134_v20, %v1131_v17  ;;  %v1138_v33 = vshll.u32 %v361_v23, 16  ;;  %v1149_v34 = vor.u32 %v1148_v22, %v1145_v21 }
  0xb3   : > { %v1166_v17 = vshll.u32 %v365_v3, 16  ;;  %v871_v22 = vshrl.u32 %v1669_v10, 16  ;;  %v874_v23 = vshll.u32 %v1669_v10, 16  ;;  %v1675_v3 = vld [vmem:[%s2048_s13 + $0x78] sm:$0xf] }
  0xb4   : > { %v606_v47 = vrot.slane %v605_v42, 4 }
  0xb6   : > { %v611_v51 = vsel %vm2151_vm4, %v606_v47, %v610_v48  ;;  %v1140_v47 = vrot.slane %v1138_v33, 5  ;;  %v1150_v48 = vrot.slane %v1149_v34, 4  ;;  %v1168_v33 = vrot.slane %v1166_v17, 5 }
  0xb7   : > { %1725 = vmatmul.msk.bf16.gmra.mxu3 %vm407_vm1, %v2078_v19  ;;  %v597_v19 = vsel %vm2151_vm4, %v592_v45, %v596_v46  ;;  %v621_v58 = vunpack.c.l.b16 %v611_v51  ;;  %v366_v45 = vld [vmem:[%s2094_s24 + $0x18] sm:$0xf]  ;;  %v1136_v46 = vrot.slane %v1135_v7, 4  ;;  %v848_v51 = vrot.slane %v846_v38, 5 }
  0xb8   : > { %1730 = vmatmul.msk.bf16.gmra.mxu0 %vm407_vm1, %v757_v29  ;;  %v620_v57 = vunpack.c.l.b16 %v597_v19  ;;  %v1667_v29 = vld [vmem:[%s2048_s13 + $0x38] sm:$0xf]  ;;  %v845_v19 = vrot.slane %v843_v37, 4  ;;  %v1155_v18 = vsel %vm2151_vm4, %v1150_v48, %v1154_v49  ;;  %v873_v37 = vrot.slane %v871_v22, 4 }
  0xb9   : > { %v860_v39 = vshll.u32 %v1667_v29, 16  ;;  %v1243_v9 = vunpack.c.l.b16 %v1155_v18  ;;  %v876_v38 = vrot.slane %v874_v23, 5  ;;  %v916_v17 = vshll.u32 %v1675_v3, 16 }
  0xba   : > { %v625_v1 = vpack.c.b16 %v621_v58, %v620_v57  ;;  %v1171_v57 = vshrl.u32 %v366_v45, 16  ;;  %v1174_v58 = vshll.u32 %v366_v45, 16  ;;  %v368_v45 = vld [vmem:[%s2094_s24 + $0x20] sm:$0xf] }
  0xbb   : > { %v862_v53 = vrot.slane %v860_v39, 5  ;;  %v877_v49 = vor.u32 %v876_v38, %v873_v37 }
  0xbf   : > { %1705 = vmatmul.msk.bf16.gmra.mxu2 %vm407_vm1, %v624_v44  ;;  %v364_v44 = vld [vmem:[%s2094_s24 + $0x10] sm:$0xf] }
  0xc0   : > { %1700 = vmatmul.msk.bf16.gmra.mxu1 %vm407_vm1, %v2053_v5  ;;  %v834_v5 = vrot.slane %v832_v55, 5  ;;  %v1157_v55 = vshrl.u32 %v364_v44, 16 }
  0xc2   : > { %v835_v4 = vor.u32 %v834_v5, %v831_v60  ;;  %v849_v60 = vor.u32 %v848_v51, %v845_v19  ;;  %v852_v5 = vshll.u32 %v1666_v50, 16  ;;  %v1159_v63 = vrot.slane %v1157_v55, 4 }
  0xc4   : > { %v836_v14 = vrot.slane %v835_v4, 4  ;;  %v367_v4 = vld [vmem:[%s2094_s24 + $0x1c] sm:$0x1]  ;;  %v850_v13 = vrot.slane %v849_v60, 4 }
  0xc5   : > { %v1180_v21 = vshll.u32 %v367_v4, 16 }
  0xc6   : > { %v841_v32 = vsel %vm2151_vm4, %v836_v14, %v840_v16  ;;  %v868_v14 = vrot.slane %v866_v62, 5 }
  0xc7   : > { %1726 = vmatmul.msk.bf16.gmra.mxu3 %vm407_vm1, %v2096_v24  ;;  %v822_v24 = vrot.slane %v821_v2, 4  ;;  %v929_v43 = vunpack.c.l.b16 %v841_v32  ;;  %v1176_v2 = vrot.slane %v1174_v58, 5  ;;  %v1182_v36 = vrot.slane %v1180_v21, 5 }
  0xc8   : > { %1731 = vmatmul.msk.bf16.gmra.mxu0 %vm407_vm1, %v759_v56  ;;  %v1160_v56 = vshll.u32 %v364_v44, 16 }
  0xc9   : > { %v827_v30 = vsel %vm2151_vm4, %v822_v24, %v826_v12  ;;  %v854_v24 = vrot.slane %v852_v5, 5 }
  0xca   : > { %v928_v42 = vunpack.c.l.b16 %v827_v30  ;;  %v1162_v0 = vrot.slane %v1160_v56, 5 }
  0xcb   : > { %v855_v30 = vsel %vm2151_vm4, %v850_v13, %v854_v24  ;;  %v1071_v24 = vpop.permute.xlu0 %1070 }
  0xcc   : > { %v936_v59 = vpack.c.b16 %v929_v43, %v928_v42  ;;  %v1163_v16 = vor.u32 %v1162_v0, %v1159_v63  ;;  %v1672_v42 = vld [vmem:[%s2048_s13 + $0x5c] sm:$0x1]  ;;  %v930_v43 = vunpack.c.l.b16 %v855_v30  ;;  %v369_v0 = vld [vmem:[%s2094_s24 + $0x24] sm:$0x1] }
  0xcd   : > { %v894_v51 = vshll.u32 %v1672_v42, 16 }
  0xce   : > { %v1164_v7 = vrot.slane %v1163_v16, 4  ;;  %v913_v16 = vshrl.u32 %v1675_v3, 16 }
  0xcf   : > { %1706 = vmatmul.msk.bf16.gmra.mxu2 %vm407_vm1, %v625_v1  ;;  %v1173_v1 = vrot.slane %v1171_v57, 4  ;;  %v896_v60 = vrot.slane %v894_v51, 5 }
  0xd0   : > { %1701 = vmatmul.msk.bf16.gmra.mxu1 %vm407_vm1, %v2072_v15  ;;  %v857_v15 = vshrl.u32 %v1667_v29, 16  ;;  %v915_v30 = vrot.slane %v913_v16, 4 }
  0xd1   : > { %v1177_v20 = vor.u32 %v1176_v2, %v1173_v1  ;;  %v371_v1 = vld [vmem:[%s2094_s24 + $0x2c] sm:$0x1]  ;;  %v1673_v2 = vld [vmem:[%s2048_s13 + $0x68] sm:$0xf] }
  0xd2   : > { %v859_v52 = vrot.slane %v857_v15, 4  ;;  %v887_v15 = vrot.slane %v885_v25, 4  ;;  %v1208_v13 = vshll.u32 %v371_v1, 16 }
  0xd3   : > { %v1178_v34 = vrot.slane %v1177_v20, 4 }
  0xd4   : > { %v863_v61 = vor.u32 %v862_v53, %v859_v52  ;;  %v1185_v52 = vshrl.u32 %v368_v45, 16  ;;  %v1188_v53 = vshll.u32 %v368_v45, 16 }
  0xd5   : > { %v1183_v48 = vsel %vm2151_vm4, %v1178_v34, %v1182_v36  ;;  %v372_v34 = vld [vmem:[%s2094_s24 + $0x30] sm:$0xf]  ;;  %v374_v36 = vld [vmem:[%s2094_s24 + $0x38] sm:$0xf] }
  0xd6   : > { %v864_v12 = vrot.slane %v863_v61, 4  ;;  %v1245_v58 = vunpack.c.l.b16 %v1183_v48  ;;  %v1187_v5 = vrot.slane %v1185_v52, 4  ;;  %v1190_v61 = vrot.slane %v1188_v53, 5 }
  0xd7   : > { %1727 = vmatmul.msk.bf16.gmra.mxu3 %vm407_vm1, %v2100_v27  ;;  %v1141_v27 = vsel %vm2151_vm4, %v1136_v46, %v1140_v47  ;;  %v370_v46 = vld [vmem:[%s2094_s24 + $0x28] sm:$0xf]  ;;  %v1169_v47 = vsel %vm2151_vm4, %v1164_v7, %v1168_v33  ;;  %v1674_v7 = vld [vmem:[%s2048_s13 + $0x6c] sm:$0x1]  ;;  %v1676_v33 = vld [vmem:[%s2048_s13 + $0x7c] sm:$0x1] }
  0xd8   : > { %1732 = vmatmul.msk.bf16.gmra.mxu0 %vm407_vm1, %v761_v40  ;;  %v1242_v8 = vunpack.c.l.b16 %v1141_v27  ;;  %v869_v32 = vsel %vm2151_vm4, %v864_v12, %v868_v14  ;;  %v1670_v40 = vld [vmem:[%s2048_s13 + $0x4c] sm:$0x1]  ;;  %v1199_v54 = vshrl.u32 %v370_v46, 16  ;;  %v1202_v55 = vshll.u32 %v370_v46, 16  ;;  %s288_s13 = sand.u32 1, %s1930_s19  }
  0xd9   : > { %v931_v44 = vunpack.c.l.b16 %v869_v32  ;;  %v880_v50 = vshll.u32 %v1670_v40, 16  ;;  %v1244_v57 = vunpack.c.l.b16 %v1169_v47  ;;  %v1191_v10 = vor.u32 %v1190_v61, %v1187_v5  ;;  %s1657_s10 = sshll.u32 %s288_s13, 6  ;;  %s1532_s27 = scalar_lea.sflag [#allocation3], %s288_s13 }
  0xda   : > { %v1250_v29 = vpack.c.b16 %v1243_v9, %v1242_v8  ;;  %v1201_v62 = vrot.slane %v1199_v54, 4  ;;  %v1204_v63 = vrot.slane %v1202_v55, 5  ;;  %v899_v12 = vshrl.u32 %v1673_v2, 16  ;;  %s2457_s11 = scalar_lea.vmem [#allocation2], %s1657_s10 }
  0xdb   : > { %v937_v56 = vpack.c.b16 %v931_v44, %v930_v43  ;;  %v882_v27 = vrot.slane %v880_v50, 5  ;;  %v1251_v4 = vpack.c.b16 %v1245_v58, %v1244_v57  ;;  %v902_v14 = vshll.u32 %v1673_v2, 16  ;;  %v373_v57 = vld [vmem:[%s2094_s24 + $0x34] sm:$0x1]  ;;  %v375_v58 = vld [vmem:[%s2094_s24 + $0x3c] sm:$0x1] }
  0xdc   : > { %v1192_v22 = vrot.slane %v1191_v10, 4  ;;  %v918_v32 = vrot.slane %v916_v17, 5  ;;  %v908_v40 = vshll.u32 %v1674_v7, 16  ;;  %v922_v43 = vshll.u32 %v1676_v33, 16  ;;  %s1546_s21 = sshll.u32 %s2457_s11, 4  ;;  %s1547_s21 = int_to_ptr.vmem [resolvable:$true] %s1546_s21 }
  0xdd   : > { %v1213_v44 = vshrl.u32 %v372_v34, 16  ;;  %v1216_v45 = vshll.u32 %v372_v34, 16  ;;  %v1227_v46 = vshrl.u32 %v374_v36, 16  ;;  %v1230_v47 = vshll.u32 %v374_v36, 16 }
  0xde   : > { %v919_v42 = vor.u32 %v918_v32, %v915_v30  ;;  %v924_v52 = vrot.slane %v922_v43, 5  ;;  %v1222_v5 = vshll.u32 %v373_v57, 16 }
  0xdf   : > { %1755 = vmatmul.msk.bf16.vlgmr.msra.gmra.mxu2 %vm407_vm1, %v2102_v28  ;;  %v888_v28 = vshll.u32 %v1671_v11, 16  ;;  %v1194_v11 = vshll.u32 %v369_v0, 16  ;;  %v1215_v53 = vrot.slane %v1213_v44, 4  ;;  %v1218_v54 = vrot.slane %v1216_v45, 5 }
  0xe0   : > { %1734 = vmatmul.msk.bf16.vlgmr.msra.gmra.mxu1 %vm407_vm1, %v936_v59  ;;  %v878_v59 = vrot.slane %v877_v49, 4  ;;  %v920_v51 = vrot.slane %v919_v42, 4  ;;  %v1229_v55 = vrot.slane %v1227_v46, 4  ;;  %v1224_v2 = vrot.slane %v1222_v5, 5 }
  0xe1   : > { %v890_v39 = vrot.slane %v888_v28, 5  ;;  %v1196_v23 = vrot.slane %v1194_v11, 5  ;;  %v1210_v28 = vrot.slane %v1208_v13, 5 }
  0xe2   : > { %v883_v8 = vsel %vm2151_vm4, %v878_v59, %v882_v27  ;;  %v1073_v59 = vpop.permute.xlu1 %1072 }
  0xe3   : > { %v891_v19 = vor.u32 %v890_v39, %v887_v15  ;;  %v932_v20 = vunpack.c.l.b16 %v883_v8  ;;  %v1197_v38 = vsel %vm2151_vm4, %v1192_v22, %v1196_v23 }
  0xe4   : > { %v1246_v48 = vunpack.c.l.b16 %v1197_v38 }
  0xe5   : > { %v892_v18 = vrot.slane %v891_v19, 4  ;;  %v910_v19 = vrot.slane %v908_v40, 5 }
  0xe7   : > { %1760 = vmatmul.msk.bf16.vlgmr.msra.gmra.mxu3 %vm407_vm1, %v1069_v26  ;;  %v897_v9 = vsel %vm2151_vm4, %v892_v18, %v896_v60  ;;  %v901_v26 = vrot.slane %v899_v12, 4  ;;  %v1219_v60 = vor.u32 %v1218_v54, %v1215_v53  ;;  %v1075_v12 = vpop.permute.xlu2 %1074 }
  0xe8   : > { %1765 = vmatmul.msk.bf16.vlgmr.msra.gmra.mxu0 %vm407_vm1, %v1250_v29  ;;  %v933_v21 = vunpack.c.l.b16 %v897_v9  ;;  %v904_v29 = vrot.slane %v902_v14, 5 }
  0xe9   : > { %v1220_v1 = vrot.slane %v1219_v60, 4 }
  0xea   : > { %v938_v37 = vpack.c.b16 %v933_v21, %v932_v20  ;;  %v905_v39 = vor.u32 %v904_v29, %v901_v26 }
  0xeb   : > { %v1225_v10 = vsel %vm2151_vm4, %v1220_v1, %v1224_v2 }
  0xec   : > { %v906_v50 = vrot.slane %v905_v39, 4 }
  0xee   : > { %v911_v18 = vsel %vm2151_vm4, %v906_v50, %v910_v19 }
  0xef   : > { %1756 = vmatmul.msk.bf16.gmra.mxu2 %vm407_vm1, %v2112_v31  ;;  %v1205_v31 = vor.u32 %v1204_v63, %v1201_v62  ;;  %v1236_v62 = vshll.u32 %v375_v58, 16  ;;  %v934_v63 = vunpack.c.l.b16 %v911_v18 }
  0xf0   : > { %1735 = vmatmul.msk.bf16.gmra.mxu1 %vm407_vm1, %v937_v56  ;;  %v1232_v56 = vrot.slane %v1230_v47, 5 }
  0xf1   : > { %v1206_v25 = vrot.slane %v1205_v31, 4  ;;  %v1248_v31 = vunpack.c.l.b16 %v1225_v10 }
  0xf2   : > { %v1233_v61 = vor.u32 %v1232_v56, %v1229_v55 }
  0xf3   : > { %v1211_v15 = vsel %vm2151_vm4, %v1206_v25, %v1210_v28 }
  0xf4   : > { %v1247_v49 = vunpack.c.l.b16 %v1211_v15  ;;  %v1234_v3 = vrot.slane %v1233_v61, 4 }
  0xf6   : > { %v1252_v27 = vpack.c.b16 %v1247_v49, %v1246_v48 }
  0xf7   : > { %1761 = vmatmul.msk.bf16.gmra.mxu3 %vm407_vm1, %v1071_v24 }
  0xf8   : > { %1766 = vmatmul.msk.bf16.gmra.mxu0 %vm407_vm1, %v1251_v4  ;;  %v1238_v4 = vrot.slane %v1236_v62, 5 }
  0xfa   : > { %v1239_v11 = vsel %vm2151_vm4, %v1234_v3, %v1238_v4 }
  0xfb   : > { %v1249_v13 = vunpack.c.l.b16 %v1239_v11 }
  0xfd   : > { %v1253_v14 = vpack.c.b16 %v1249_v13, %v1248_v31 }
  0xff   : > { %1757 = vmatmul.msk.bf16.gmra.mxu2 %vm407_vm1, %v2121_v35  ;;  %v925_v35 = vsel %vm2151_vm4, %v920_v51, %v924_v52 }
 0x100   : > { %1736 = vmatmul.msk.bf16.gmra.mxu1 %vm407_vm1, %v938_v37  ;;  %v935_v0 = vunpack.c.l.b16 %v925_v35 }
 0x102   : > { %v939_v8 = vpack.c.b16 %v935_v0, %v934_v63 }
 0x107   : > { %1762 = vmatmul.msk.bf16.gmra.mxu3 %vm407_vm1, %v1073_v59 }
 0x108   : > { %1767 = vmatmul.msk.bf16.gmra.mxu0 %vm407_vm1, %v1252_v27 }
 0x10d   : > { %v2299_v9 = vpop.f32.mrf.mxu1 }
 0x10f   : > { %1758 = vmatmul.msk.bf16.gmra.mxu2 %vm407_vm1, %v2176_v41 }
 0x110   : > { %1737 = vmatmul.msk.bf16.gmra.mxu1 %vm407_vm1, %v939_v8 }
 0x112   : > { %v2308_v24 = vpop.f32.mrf.mxu2 }
 0x115   : > { %v433_v16 = vpop.f32.mrf.mxu0  ;;  %v2310_v17 = vpop.f32.mrf.mxu1 }
 0x117   : > { %1763 = vmatmul.msk.bf16.gmra.mxu3 %vm407_vm1, %v1075_v12 }
 0x118   : > { %1768 = vmatmul.msk.bf16.gmra.mxu0 %vm407_vm1, %v1253_v14 }
 0x11a   : > { %v2314_v6 = vpop.f32.mrf.mxu2  ;;  %v2316_v20 = vpop.f32.mrf.mxu3 }
 0x11d   : > { %v435_v41 = vpop.f32.mrf.mxu0  ;;  %v477_v21 = vpop.f32.mrf.mxu1 }
 0x11e   : > { %v478_v54 = vadd.f32 %v477_v21, %v433_v16 }
 0x122   : > { %v2318_v22 = vpop.f32.mrf.mxu3  ;;  %v650_v23 = vpop.f32.mrf.mxu2 }
 0x123   : > { %v670_v57 = vadd.f32 %v650_v23, %v478_v54 }
 0x125   : > { %v479_v25 = vpop.f32.mrf.mxu1  ;;  %v786_v28 = vpop.f32.mrf.mxu0 }
 0x126   : > { %v480_v18 = vadd.f32 %v479_v25, %v435_v41 }
 0x12a   : > { %v652_v26 = vpop.f32.mrf.mxu2  ;;  %v724_v29 = vpop.f32.mrf.mxu3 }
 0x12b   : > { %v744_v58 = vadd.f32 %v724_v29, %v670_v57  ;;  %v671_v61 = vadd.f32 %v652_v26, %v480_v18 }
 0x12d   : > { %v482_v30 = vpop.f32.mrf.mxu1  ;;  %v788_v32 = vpop.f32.mrf.mxu0  ;;  %v806_v35 = vadd.f32 %v786_v28, %v744_v58 }
 0x12e   : > { %v483_v4 = vadd.f32 %v482_v30, %v2299_v9 }
 0x132   : > { %v655_v7 = vpop.f32.mrf.mxu2  ;;  %v726_v33 = vpop.f32.mrf.mxu3 }
 0x133   : > { %v745_v63 = vadd.f32 %v726_v33, %v671_v61  ;;  %v672_v13 = vadd.f32 %v655_v7, %v483_v4 }
 0x135   : > { %v484_v34 = vpop.f32.mrf.mxu1  ;;  %v791_v36 = vpop.f32.mrf.mxu0  ;;  %v807_v8 = vadd.f32 %v788_v32, %v745_v63 }
 0x136   : > { %v485_v26 = vadd.f32 %v484_v34, %v2310_v17 }
 0x13a   : > { %v657_v37 = vpop.f32.mrf.mxu2  ;;  %v729_v38 = vpop.f32.mrf.mxu3 }
 0x13b   : > { %v746_v41 = vadd.f32 %v729_v38, %v672_v13  ;;  %v673_v33 = vadd.f32 %v657_v37, %v485_v26 }
 0x13d   : > { %v2320_v15 = vpop.f32.mrf.mxu1  ;;  %v2322_v39 = vpop.f32.mrf.mxu0  ;;  %v808_v29 = vadd.f32 %v791_v36, %v746_v41 }
 0x13e   : > { %v488_v36 = vadd.f32 %v2320_v15, %v2308_v24 }
 0x142   : > { %v2324_v40 = vpop.f32.mrf.mxu2  ;;  %v731_v42 = vpop.f32.mrf.mxu3 }
 0x143   : > { %v747_v38 = vadd.f32 %v731_v42, %v673_v33 }
 0x145   : > { %v2326_v43 = vpop.f32.mrf.mxu1  ;;  %v2328_v44 = vpop.f32.mrf.mxu0  ;;  %v809_v37 = vadd.f32 %v2322_v39, %v747_v38 }
 0x14a   : > { %v2330_v45 = vpop.f32.mrf.mxu2  ;;  %v2332_v46 = vpop.f32.mrf.mxu3 }
 0x14d   : > { %v2334_v47 = vpop.f32.mrf.mxu1  ;;  %v2336_v48 = vpop.f32.mrf.mxu0 }
 0x152   : > { %v2338_v49 = vpop.f32.mrf.mxu2  ;;  %v2340_v50 = vpop.f32.mrf.mxu3 }
 0x155   : > { %v2342_v19 = vpop.f32.mrf.mxu1  ;;  %v2344_v51 = vpop.f32.mrf.mxu0 }
 0x15a   : > { %v2346_v52 = vpop.f32.mrf.mxu2  ;;  %v2348_v53 = vpop.f32.mrf.mxu3 }
 0x15d   : > { %v2350_v55 = vpop.f32.mrf.mxu0  ;;  %v964_v56 = vpop.f32.mrf.mxu1 }
 0x15e   : > { %v984_v62 = vadd.f32 %v964_v56, %v806_v35 }
 0x162   : > { %v2352_v59 = vpop.f32.mrf.mxu3  ;;  %v1038_v27 = vpop.f32.mrf.mxu2 }
 0x163   : > { %v1058_v0 = vadd.f32 %v1038_v27, %v984_v62 }
 0x165   : > { %v966_v60 = vpop.f32.mrf.mxu1  ;;  %v1278_v5 = vpop.f32.mrf.mxu0 }
 0x166   : > { %v985_v12 = vadd.f32 %v966_v60, %v807_v8 }
 0x16a   : > { %v1040_v1 = vpop.f32.mrf.mxu2  ;;  %v1100_v2 = vpop.f32.mrf.mxu3 }
 0x16b   : > { %v1120_v3 = vadd.f32 %v1100_v2, %v1058_v0  ;;  %v1059_v21 = vadd.f32 %v1040_v1, %v985_v12 }
 0x16d   : > { %v2355_v10 = vadd.f32 %v1278_v5, %v1120_v3  ;;  %v969_v11 = vpop.f32.mrf.mxu1  ;;  %v1280_v31 = vpop.f32.mrf.mxu0  ;;  %v674_v5 = vadd.f32 %v2324_v40, %v488_v36  ;;  %v490_v40 = vadd.f32 %v2326_v43, %v2314_v6 }
 0x16e   : > { %v986_v54 = vadd.f32 %v969_v11, %v808_v29 }
 0x16f   : > { %v1307_v14 = vsel %vm1306_vm5, %v2355_v10, 0.0  ;;  %v1339_v16 = vmul.f32 %v2355_v10, %v2355_v10  ;;  %v748_v63 = vadd.f32 %v2332_v46, %v674_v5  ;;  %v675_v46 = vadd.f32 %v2330_v45, %v490_v40 }
 0x170   : > { %1308 = vadd.xlane.f32.xlu0 %v1307_v14  ;;  %v493_v45 = vadd.f32 %v2334_v47, %v2316_v20 }
 0x171   : > { %v1347_v23 = vsel %vm1306_vm5, %v1339_v16, 0.0  ;;  %v810_v3 = vadd.f32 %v2328_v44, %v748_v63  ;;  %v749_v12 = vadd.f32 %v2340_v50, %v675_v46 }
 0x172   : > { %v1102_v25 = vpop.f32.mrf.mxu3  ;;  %1348 = vadd.xlane.f32.xlu1 %v1347_v23  ;;  %v1043_v9 = vpop.f32.mrf.mxu2  ;;  %v676_v50 = vadd.f32 %v2338_v49, %v493_v45  ;;  %v495_v49 = vadd.f32 %v2342_v19, %v2318_v22 }
 0x173   : > { %v1121_v28 = vadd.f32 %v1102_v25, %v1059_v21  ;;  %v1060_v57 = vadd.f32 %v1043_v9, %v986_v54  ;;  %v811_v21 = vadd.f32 %v2336_v48, %v749_v12 }
 0x174   : > { %v750_v29 = vadd.f32 %v2348_v53, %v676_v50  ;;  %v677_v38 = vadd.f32 %v2346_v52, %v495_v49 }
 0x175   : > { %v2363_v30 = vadd.f32 %v1280_v31, %v1121_v28  ;;  %v971_v32 = vpop.f32.mrf.mxu1  ;;  %v1283_v7 = vpop.f32.mrf.mxu0 }
 0x176   : > { %v987_v61 = vadd.f32 %v971_v32, %v809_v37  ;;  %v812_v54 = vadd.f32 %v2344_v51, %v750_v29 }
 0x177   : > { %v1340_v56 = vmul.f32 %v2363_v30, %v2363_v30  ;;  %v1310_v27 = vsel %vm1306_vm5, %v2363_v30, 0.0 }
 0x179   : > { %v1350_v58 = vsel %vm1306_vm5, %v1340_v56, 0.0 }
 0x17a   : > { %v1105_v18 = vpop.f32.mrf.mxu3  ;;  %1351 = vadd.xlane.f32.xlu2 %v1350_v58  ;;  %1311 = vadd.xlane.f32.xlu1 %v1310_v27  ;;  %v1045_v17 = vpop.f32.mrf.mxu2  ;;  %v751_v58 = vadd.f32 %v2352_v59, %v677_v38 }
 0x17b   : > { %v1122_v34 = vadd.f32 %v1105_v18, %v1060_v57  ;;  %v1061_v0 = vadd.f32 %v1045_v17, %v987_v61 }
 0x17c   : > { %v813_v22 = vadd.f32 %v2350_v55, %v751_v58 }
 0x17d   : > { %v2373_v35 = vadd.f32 %v1283_v7, %v1122_v34  ;;  %v1285_v60 = vpop.f32.mrf.mxu0  ;;  %v974_v42 = vpop.f32.mrf.mxu1 }
 0x17e   : > { %v988_v11 = vadd.f32 %v974_v42, %v810_v3 }
 0x17f   : > { %v1341_v62 = vmul.f32 %v2373_v35, %v2373_v35  ;;  %v1313_v24 = vsel %vm1306_vm5, %v2373_v35, 0.0 }
 0x181   : > { %v1353_v1 = vsel %vm1306_vm5, %v1341_v62, 0.0 }
 0x182   : > { %v1107_v15 = vpop.f32.mrf.mxu3  ;;  %1354 = vadd.xlane.f32.xlu0 %v1353_v1  ;;  %1314 = vadd.xlane.f32.xlu2 %v1313_v24  ;;  %v1048_v39 = vpop.f32.mrf.mxu2 }
 0x183   : > { %v1123_v2 = vadd.f32 %v1107_v15, %v1061_v0  ;;  %v1062_v14 = vadd.f32 %v1048_v39, %v988_v11 }
 0x185   : > { %v2385_v4 = vadd.f32 %v1285_v60, %v1123_v2  ;;  %v1288_v8 = vpop.f32.mrf.mxu0  ;;  %v976_v13 = vpop.f32.mrf.mxu1 }
 0x186   : > { %v989_v25 = vadd.f32 %v976_v13, %v811_v21 }
 0x187   : > { %v1342_v31 = vmul.f32 %v2385_v4, %v2385_v4  ;;  %v1316_v6 = vsel %vm1306_vm5, %v2385_v4, 0.0 }
 0x189   : > { %v1356_v16 = vsel %vm1306_vm5, %v1342_v31, 0.0 }
 0x18a   : > { %v1110_v43 = vpop.f32.mrf.mxu3  ;;  %1357 = vadd.xlane.f32.xlu1 %v1356_v16  ;;  %1317 = vadd.xlane.f32.xlu2 %v1316_v6  ;;  %v1050_v44 = vpop.f32.mrf.mxu2 }
 0x18b   : > { %v1124_v41 = vadd.f32 %v1110_v43, %v1062_v14  ;;  %v1063_v32 = vadd.f32 %v1050_v44, %v989_v25 }
 0x18d   : > { %v2397_v23 = vadd.f32 %v1288_v8, %v1124_v41  ;;  %v1290_v26 = vpop.f32.mrf.mxu0  ;;  %v979_v47 = vpop.f32.mrf.mxu1 }
 0x18e   : > { %v990_v57 = vadd.f32 %v979_v47, %v812_v54 }
 0x18f   : > { %v1319_v9 = vsel %vm1306_vm5, %v2397_v23, 0.0  ;;  %v1343_v28 = vmul.f32 %v2397_v23, %v2397_v23 }
 0x190   : > { %1320 = vadd.xlane.f32.xlu0 %v1319_v9 }
 0x191   : > { %v1359_v20 = vsel %vm1306_vm5, %v1343_v28, 0.0 }
 0x192   : > { %v1112_v48 = vpop.f32.mrf.mxu3  ;;  %1360 = vadd.xlane.f32.xlu2 %v1359_v20  ;;  %v1053_v33 = vpop.f32.mrf.mxu2 }
 0x193   : > { %v1125_v7 = vadd.f32 %v1112_v48, %v1063_v32  ;;  %v1064_v27 = vadd.f32 %v1053_v33, %v990_v57  ;;  %v2447_v57 = vld [vmem:[%s2546_s4] ss:$0 sm:$0xff] }
 0x195   : > { %v2409_v56 = vadd.f32 %v1290_v26, %v1125_v7  ;;  %v1293_v18 = vpop.f32.mrf.mxu0  ;;  %v981_v36 = vpop.f32.mrf.mxu1  ;;  %v2442_v7 = vld [vmem:[%s2545_s3] ss:$0 sm:$0xff] }
 0x196   : > { %v991_v37 = vadd.f32 %v981_v36, %v813_v22 }
 0x197   : > { %v1322_v53 = vsel %vm1306_vm5, %v2409_v56, 0.0  ;;  %v1344_v24 = vmul.f32 %v2409_v56, %v2409_v56 }
 0x198   : > { %1323 = vadd.xlane.f32.xlu1 %v1322_v53 }
 0x199   : > { %v1362_v15 = vsel %vm1306_vm5, %v1344_v24, 0.0 }
 0x19a   : > { %v1115_v17 = vpop.f32.mrf.mxu3  ;;  %v1055_v51 = vpop.f32.mrf.mxu2 }
 0x19b   : > { %v1126_v34 = vadd.f32 %v1115_v17, %v1064_v27  ;;  %v1065_v42 = vadd.f32 %v1055_v51, %v991_v37 }
 0x19d   : > { %v2416_v19 = vadd.f32 %v1293_v18, %v1126_v34  ;;  %v1295_v62 = vpop.f32.mrf.mxu0 }
 0x19f   : > { %v1325_v52 = vsel %vm1306_vm5, %v2416_v19, 0.0  ;;  %v1345_v60 = vmul.f32 %v2416_v19, %v2416_v19 }
 0x1a0   : > { %1326 = vadd.xlane.f32.xlu2 %v1325_v52 }
 0x1a1   : > { %v1365_v59 = vsel %vm1306_vm5, %v1345_v60, 0.0 }
 0x1a2   : > { %v1117_v5 = vpop.f32.mrf.mxu3  ;;  %1366 = vadd.xlane.f32.xlu1 %v1365_v59 }
 0x1a3   : > { %v1127_v61 = vadd.f32 %v1117_v5, %v1065_v42 }
 0x1a5   : > { %v2423_v63 = vadd.f32 %v1295_v62, %v1127_v61 }
 0x1a7   : > { %v1328_v55 = vsel %vm1306_vm5, %v2423_v63, 0.0  ;;  %v1346_v0 = vmul.f32 %v2423_v63, %v2423_v63 }
 0x1a8   : > { %1329 = vadd.xlane.f32.xlu0 %v1328_v55 }
 0x1a9   : > { %v1368_v1 = vsel %vm1306_vm5, %v1346_v0, 0.0 }
 0x1aa   : > { %1369 = vadd.xlane.f32.xlu2 %v1368_v1 }
 0x1b0   : > { %1363 = vadd.xlane.f32.xlu0 %v1362_v15 }
 0x1e3   : > { %v1309_v39 = vpop.xlane.xlu0 %1308 }
 0x1e4   : > { %v1331_v2 = vmul.f32 0.125, %v1309_v39 }
 0x1e5   : > { %v1349_v40 = vpop.xlane.xlu1 %1348 }
 0x1e6   : > { %v1379_v3 = vmul.f32 %v1331_v2, %v1331_v2  ;;  %v1371_v8 = vmul.f32 0.125, %v1349_v40  ;;  %v1395_v48 = vsub.f32 %v2355_v10, %v1331_v2 }
 0x1e8   : > { %v1387_v46 = vsub.f32 %v1371_v8, %v1379_v3 }
 0x1ea   : > { %v1403_v11 = vadd.f32 1e-06, %v1387_v46 }
 0x1ec   : > { %1852 = vrsqrt.f32 %v1403_v11  ;;  %vm1417_vm7 = vweird.f32 %v1403_v11 }
 0x1ed   : > { %v1352_v31 = vpop.xlane.xlu2 %1351  ;;  %v1312_v13 = vpop.xlane.xlu1 %1311 }
 0x1ee   : > { %v1332_v12 = vmul.f32 0.125, %v1312_v13  ;;  %v1372_v14 = vmul.f32 0.125, %v1352_v31 }
 0x1f0   : > { %v1380_v16 = vmul.f32 %v1332_v12, %v1332_v12  ;;  %v1396_v55 = vsub.f32 %v2363_v30, %v1332_v12 }
 0x1f2   : > { %v1853_v6 = vpop.eup %1852  ;;  %v1388_v43 = vsub.f32 %v1372_v14, %v1380_v16 }
 0x1f3   : > { %v1412_v44 = vmul.f32 %v1853_v6, %v1403_v11  ;;  %vm1418_vm6 = vweird.f32 %v1853_v6 }
 0x1f4   : > { %v1404_v41 = vadd.f32 1e-06, %v1388_v43  ;;  %vm1419_vm8 = vmor %vm1417_vm7, %vm1418_vm6 }
 0x1f5   : > { %v1413_v45 = vmul.f32 %v1853_v6, %v1412_v44  ;;  %v1355_v21 = vpop.xlane.xlu0 %1354  ;;  %v1315_v50 = vpop.xlane.xlu2 %1314 }
 0x1f6   : > { %1854 = vrsqrt.f32 %v1404_v41  ;;  %v2433_v25 = vmul.f32 0.125, %v1315_v50  ;;  %v1373_v28 = vmul.f32 0.125, %v1355_v21  ;;  %vm1427_vm10 = vweird.f32 %v1404_v41 }
 0x1f7   : > { %v1414_v9 = vmul.f32 0.5, %v1413_v45 }
 0x1f8   : > { %v1381_v26 = vmul.f32 %v2433_v25, %v2433_v25  ;;  %v1397_v12 = vsub.f32 %v2373_v35, %v2433_v25 }
 0x1f9   : > { %v1415_v29 = vsub.f32 1.5, %v1414_v9 }
 0x1fa   : > { %v1389_v32 = vsub.f32 %v1373_v28, %v1381_v26 }
 0x1fb   : > { %v1416_v20 = vmul.f32 %v1853_v6, %v1415_v29 }
 0x1fc   : > { %v1855_v47 = vpop.eup %1854  ;;  %v1405_v33 = vadd.f32 1e-06, %v1389_v32 }
 0x1fd   : > { %v1420_v49 = vsel %vm1419_vm8, %v1853_v6, %v1416_v20  ;;  %v1422_v54 = vmul.f32 %v1855_v47, %v1404_v41  ;;  %v1318_v38 = vpop.xlane.xlu2 %1317  ;;  %v1358_v10 = vpop.xlane.xlu1 %1357  ;;  %vm1428_vm9 = vweird.f32 %v1855_v47 }
 0x1fe   : > { %v1491_v53 = vmul.f32 %v1420_v49, %v1395_v48  ;;  %1856 = vrsqrt.f32 %v1405_v33  ;;  %v2451_v27 = vmul.f32 0.125, %v1318_v38  ;;  %v1374_v34 = vmul.f32 0.125, %v1358_v10  ;;  %vm1429_vm11 = vmor %vm1427_vm10, %vm1428_vm9 }
 0x1ff   : > { %v1423_v58 = vmul.f32 %v1855_v47, %v1422_v54  ;;  %vm1437_vm13 = vweird.f32 %v1405_v33 }
 0x200   : > { %v1503_v18 = vmul.f32 %v2442_v7, %v1491_v53  ;;  %v1382_v36 = vmul.f32 %v2451_v27, %v2451_v27 }
 0x201   : > { %v1424_v17 = vmul.f32 0.5, %v1423_v58 }
 0x202   : > { %v1515_v22 = vadd.f32 %v2447_v57, %v1503_v18  ;;  %v1390_v37 = vsub.f32 %v1374_v34, %v1382_v36 }
 0x203   : > { %v1425_v51 = vsub.f32 1.5, %v1424_v17  ;;  %v1321_v52 = vpop.xlane.xlu0 %1320 }
 0x204   : > { %v1857_v60 = vpop.eup %1856  ;;  %1523 = vst.msk [vmem:[%s2457_s11] sm:$0xff] %vm1306_vm5, %v1515_v22  ;;  %v2461_v42 = vmul.f32 0.125, %v1321_v52  ;;  %v1406_v61 = vadd.f32 1e-06, %v1390_v37 }
 0x205   : > { %v1426_v59 = vmul.f32 %v1855_v47, %v1425_v51  ;;  %v1432_v5 = vmul.f32 %v1857_v60, %v1405_v33  ;;  %v1361_v62 = vpop.xlane.xlu2 %1360  ;;  %vm1438_vm12 = vweird.f32 %v1857_v60 }
 0x206   : > { %v1383_v0 = vmul.f32 %v2461_v42, %v2461_v42  ;;  %v1375_v1 = vmul.f32 0.125, %v1361_v62  ;;  %1858 = vrsqrt.f32 %v1406_v61  ;;  %vm1439_vm14 = vmor %vm1437_vm13, %vm1438_vm12  ;;  %vm1447_vm0 = vweird.f32 %v1406_v61 }
 0x207   : > { %v1430_v24 = vsel %vm1429_vm11, %v1855_v47, %v1426_v59  ;;  %v1433_v15 = vmul.f32 %v1857_v60, %v1432_v5  ;;  %v1398_v47 = vsub.f32 %v2385_v4, %v2451_v27  ;;  %v1399_v17 = vsub.f32 %v2397_v23, %v2461_v42 }
 0x208   : > { %v1492_v39 = vmul.f32 %v1430_v24, %v1396_v55  ;;  %v1391_v2 = vsub.f32 %v1375_v1, %v1383_v0 }
 0x209   : > { %v1434_v40 = vmul.f32 0.5, %v1433_v15 }
 0x20a   : > { %v1504_v3 = vmul.f32 %v2442_v7, %v1492_v39  ;;  %v1407_v8 = vadd.f32 1e-06, %v1391_v2 }
 0x20b   : > { %v1435_v46 = vsub.f32 1.5, %v1434_v40  ;;  %v1324_v13 = vpop.xlane.xlu1 %1323 }
 0x20c   : > { %v1516_v11 = vadd.f32 %v2447_v57, %v1504_v3  ;;  %1860 = vrsqrt.f32 %v1407_v8  ;;  %v1859_v30 = vpop.eup %1858  ;;  %vm1457_vm3 = vweird.f32 %v1407_v8 }
 0x20d   : > { %v1436_v31 = vmul.f32 %v1857_v60, %v1435_v46  ;;  %v1442_v14 = vmul.f32 %v1859_v30, %v1406_v61  ;;  %vm1448_vm15 = vweird.f32 %v1859_v30 }
 0x20e   : > { %1524 = vst.msk [vmem:[%s2457_s11 + $0x8] sm:$0xff] %vm1306_vm5, %v1516_v11  ;;  %vm1449_vm1 = vmor %vm1447_vm0, %vm1448_vm15 }
 0x20f   : > { %v1440_v16 = vsel %vm1439_vm14, %v1857_v60, %v1436_v31  ;;  %v1443_v43 = vmul.f32 %v1859_v30, %v1442_v14  ;;  %v1336_v60 = vmul.f32 0.125, %v1324_v13 }
 0x210   : > { %v1493_v6 = vmul.f32 %v1440_v16, %v1397_v12 }
 0x211   : > { %v1444_v45 = vmul.f32 0.5, %v1443_v43  ;;  %v1384_v55 = vmul.f32 %v1336_v60, %v1336_v60 }
 0x212   : > { %v1861_v44 = vpop.eup %1860  ;;  %v1505_v41 = vmul.f32 %v2442_v7, %v1493_v6 }
 0x213   : > { %v1452_v21 = vmul.f32 %v1861_v44, %v1407_v8  ;;  %v1327_v50 = vpop.xlane.xlu2 %1326  ;;  %v1445_v28 = vsub.f32 1.5, %v1444_v45  ;;  %vm1458_vm2 = vweird.f32 %v1861_v44 }
 0x214   : > { %v1517_v9 = vadd.f32 %v2447_v57, %v1505_v41  ;;  %v1337_v26 = vmul.f32 0.125, %v1327_v50  ;;  %vm1459_vm4 = vmor %vm1457_vm3, %vm1458_vm2 }
 0x215   : > { %v1453_v29 = vmul.f32 %v1861_v44, %v1452_v21  ;;  %v1367_v32 = vpop.xlane.xlu1 %1366  ;;  %v1446_v35 = vmul.f32 %v1859_v30, %v1445_v28 }
 0x216   : > { %1525 = vst.msk [vmem:[%s2457_s11 + $0x10] sm:$0xff] %vm1306_vm5, %v1517_v9  ;;  %v1385_v25 = vmul.f32 %v1337_v26, %v1337_v26  ;;  %v1377_v20 = vmul.f32 0.125, %v1367_v32  ;;  %v1401_v46 = vsub.f32 %v2416_v19, %v1337_v26 }
 0x217   : > { %v1454_v48 = vmul.f32 0.5, %v1453_v29  ;;  %v1450_v33 = vsel %vm1449_vm1, %v1859_v30, %v1446_v35 }
 0x218   : > { %v1393_v49 = vsub.f32 %v1377_v20, %v1385_v25  ;;  %v1494_v54 = vmul.f32 %v1450_v33, %v1398_v47 }
 0x219   : > { %v1455_v38 = vsub.f32 1.5, %v1454_v48 }
 0x21a   : > { %v1409_v53 = vadd.f32 1e-06, %v1393_v49  ;;  %v1506_v10 = vmul.f32 %v2442_v7, %v1494_v54 }
 0x21b   : > { %v1456_v58 = vmul.f32 %v1861_v44, %v1455_v38  ;;  %v1330_v18 = vpop.xlane.xlu0 %1329 }
 0x21c   : > { %1862 = vrsqrt.f32 %v1409_v53  ;;  %v1338_v4 = vmul.f32 0.125, %v1330_v18  ;;  %v1518_v27 = vadd.f32 %v2447_v57, %v1506_v10  ;;  %vm1477_vm7 = vweird.f32 %v1409_v53 }
 0x21d   : > { %v1460_v34 = vsel %vm1459_vm4, %v1861_v44, %v1456_v58  ;;  %v1370_v36 = vpop.xlane.xlu2 %1369 }
 0x21e   : > { %v1495_v22 = vmul.f32 %v1460_v34, %v1399_v17  ;;  %v1386_v51 = vmul.f32 %v1338_v4, %v1338_v4  ;;  %v1378_v37 = vmul.f32 0.125, %v1370_v36  ;;  %1526 = vst.msk [vmem:[%s2457_s11 + $0x18] sm:$0xff] %vm1306_vm5, %v1518_v27  ;;  %v1402_v19 = vsub.f32 %v2423_v63, %v1338_v4 }
 0x21f   : > { %v1400_v63 = vsub.f32 %v2409_v56, %v1336_v60 }
 0x220   : > { %v1507_v52 = vmul.f32 %v2442_v7, %v1495_v22  ;;  %v1394_v59 = vsub.f32 %v1378_v37, %v1386_v51 }
 0x222   : > { %v1863_v5 = vpop.eup %1862  ;;  %v1519_v23 = vadd.f32 %v2447_v57, %v1507_v52  ;;  %v1410_v42 = vadd.f32 1e-06, %v1394_v59 }
 0x223   : > { %v1472_v61 = vmul.f32 %v1863_v5, %v1409_v53  ;;  %v1364_v62 = vpop.xlane.xlu0 %1363  ;;  %vm1478_vm6 = vweird.f32 %v1863_v5 }
 0x224   : > { %1527 = vst.msk [vmem:[%s2457_s11 + $0x20] sm:$0xff] %vm1306_vm5, %v1519_v23  ;;  %1864 = vrsqrt.f32 %v1410_v42  ;;  %v1376_v0 = vmul.f32 0.125, %v1364_v62  ;;  %vm1479_vm8 = vmor %vm1477_vm7, %vm1478_vm6  ;;  %vm1487_vm10 = vweird.f32 %v1410_v42 }
 0x225   : > { %v1473_v1 = vmul.f32 %v1863_v5, %v1472_v61 }
 0x226   : > { %v1392_v24 = vsub.f32 %v1376_v0, %v1384_v55 }
 0x227   : > { %v1474_v15 = vmul.f32 0.5, %v1473_v1 }
 0x228   : > { %v1408_v39 = vadd.f32 1e-06, %v1392_v24 }
 0x229   : > { %v1475_v2 = vsub.f32 1.5, %v1474_v15 }
 0x22a   : > { %v1865_v40 = vpop.eup %1864  ;;  %1866 = vrsqrt.f32 %v1408_v39  ;;  %vm1467_vm13 = vweird.f32 %v1408_v39 }
 0x22b   : > { %v1476_v3 = vmul.f32 %v1863_v5, %v1475_v2  ;;  %v1482_v8 = vmul.f32 %v1865_v40, %v1410_v42  ;;  %vm1488_vm9 = vweird.f32 %v1865_v40 }
 0x22c   : > { %vm1489_vm11 = vmor %vm1487_vm10, %vm1488_vm9 }
 0x22d   : > { %v1480_v11 = vsel %vm1479_vm8, %v1863_v5, %v1476_v3  ;;  %v1483_v30 = vmul.f32 %v1865_v40, %v1482_v8 }
 0x22e   : > { %v1497_v31 = vmul.f32 %v1480_v11, %v1401_v46 }
 0x22f   : > { %v1484_v13 = vmul.f32 0.5, %v1483_v30 }
 0x230   : > { %v1867_v12 = vpop.eup %1866  ;;  %v1509_v14 = vmul.f32 %v2442_v7, %v1497_v31 }
 0x231   : > { %v1485_v16 = vsub.f32 1.5, %v1484_v13  ;;  %v1462_v6 = vmul.f32 %v1867_v12, %v1408_v39  ;;  %vm1468_vm12 = vweird.f32 %v1867_v12 }
 0x232   : > { %v1521_v43 = vadd.f32 %v2447_v57, %v1509_v14  ;;  %vm1469_vm14 = vmor %vm1467_vm13, %vm1468_vm12 }
 0x233   : > { %v1486_v44 = vmul.f32 %v1865_v40, %v1485_v16  ;;  %v1463_v41 = vmul.f32 %v1867_v12, %v1462_v6 }
 0x234   : > { %1529 = vst.msk [vmem:[%s2457_s11 + $0x30] sm:$0xff] %vm1306_vm5, %v1521_v43 }
 0x235   : > { %v1490_v45 = vsel %vm1489_vm11, %v1865_v40, %v1486_v44  ;;  %v1464_v21 = vmul.f32 0.5, %v1463_v41 }
 0x236   : > { %v1498_v50 = vmul.f32 %v1490_v45, %v1402_v19 }
 0x237   : > { %v1465_v9 = vsub.f32 1.5, %v1464_v21 }
 0x238   : > { %v1510_v28 = vmul.f32 %v2442_v7, %v1498_v50 }
 0x239   : > { %v1466_v26 = vmul.f32 %v1867_v12, %v1465_v9 }
 0x23a   : > { %v1522_v29 = vadd.f32 %v2447_v57, %v1510_v28 }
 0x23b   : > { %v1470_v32 = vsel %vm1469_vm14, %v1867_v12, %v1466_v26 }
 0x23c   : > { %1530 = vst.msk [vmem:[%s2457_s11 + $0x38] sm:$0xff] %vm1306_vm5, %v1522_v29  ;;  %v1496_v35 = vmul.f32 %v1470_v32, %v1400_v63 }
 0x23e   : > { %v1508_v25 = vmul.f32 %v2442_v7, %v1496_v35 }
 0x240   : > { %v1520_v20 = vadd.f32 %v2447_v57, %v1508_v25 }
 0x242   : > { %1528 = vst.msk [vmem:[%s2457_s11 + $0x28] sm:$0xff] %vm1306_vm5, %v1520_v20 }
 0x243   : > { %1895 = shalt.err (!%p1892_p5)
}
 0x244   : > { %s1949_s13 = smov 128   ;;  %s1950_s11 = smov 8  }
 0x245   : > { %1792 = dma.vmem_to_hbm [thread:$0]  (%p2021_p4), %s1547_s21, 1024, %s1549_s25, %s1532_s27, %s1949_s13, %s1949_s13, %s1950_s11  }
 0x246 PF: > { %p1798_p6 = scmp.ge.s32.totalorder %s1946_s23, 2  ;;  %s1563_s12 = sand.u32 1, %s1926_s18  }
 0x247   : > { %s1564_s15 = scalar_lea.sflag [#allocation3], %s1563_s12 }
 0x248   : > { %p1795_p7 = pnand %p1798_p6, %p2028_p8 }
 0x24a   : > { %p1796_p9 = pneg %p1795_p7 }
 0x24c   : > { %1921 = dma.done.wait (%p1796_p9), %s1564_s15, 1024  }
 0x24d   : > { %1923 = vsyncadd (%p1796_p9), %s1564_s15, 4294966272  ;;  %s18_s23 = sadd.s32 1, %s1946_s23   ;;  %s2552_s18 = smov %s1930_s19 }
 0x24e   : > { %p15_p10 = scmp.ge.s32.totalorder %s18_s23, 4   ;;  %s2553_s19 = smov %s1934_s20 }
 0x24f   : > { %s2554_s20 = smov %s2034_s6  ;;  %s2555_s21 = smov %s1942_s22 }
 0x250   : > { %s2556_s22 = smov %s2558_s26  ;;  %17 = sbr.rel (!%p15_p10) target bundleno = 4 (0x4), region = 87 }
 0x255   :  { %1570 = vsyncpa [#allocation3], 1 }
 0x256   :  { %1572 = vsyncpa [#allocation3 + $0x1], 1 }

</bundles_post_ra>
